<compile_context>
chip_gen: v5e
topology: v5e:2x2
jax: 0.10.0
libtpu: 0.0.40
codegen_flags: <defaults>
</compile_context>

<pallas_src>
import math

import jax
import jax.numpy as jnp
from jax.experimental import pallas as pl
from jax.experimental.pallas import tpu as pltpu

# ----- model hyperparameters (small, consistent with a BERT-style encoder) -----
B = 2          # batch
S = 8          # sequence length
H = 32         # hidden size
NH = 4         # attention heads
HD = H // NH   # head dim
I = 64         # FFN intermediate size
VOCAB = 100
NLAYERS = 2
LN_EPS = 1e-12


def _layer_norm(x, gamma, beta):
    mu = jnp.mean(x, axis=-1, keepdims=True)
    var = jnp.mean((x - mu) ** 2, axis=-1, keepdims=True)
    return (x - mu) * jax.lax.rsqrt(var + LN_EPS) * gamma + beta


# ---------------------------------------------------------------------------
# Fused Pallas kernel: all encoder layers + pooler + masked mean pooling.
# One grid step per batch element (parallel across TCs on v7x).
# ---------------------------------------------------------------------------
def fused_rep_encoder_kernel(x_ref, mask_ref,
                             wqkv_ref, bqkv_ref, wo_ref, bo_ref,
                             ln1g_ref, ln1b_ref,
                             w1_ref, b1_ref, w2_ref, b2_ref,
                             ln2g_ref, ln2b_ref,
                             wp_ref, bp_ref,
                             tok_ref, pooled_ref):
    x = x_ref[0]                      # (S, H) f32 — this batch element
    mask = mask_ref[0]                # (1, S) f32 (1 = keep)

    # additive attention bias (BERT-style), hoisted once for all layers
    bias = (1.0 - mask) * (-1e9)      # (1, S) broadcasts over (S_q, S_k) scores
    scale = 1.0 / math.sqrt(HD)

    # ---- encoder layers (static unrolled loop; weights resident in VMEM) ----
    for l in range(NLAYERS):
        # fused QKV projection: one (S,H) @ (H,3H) matmul
        qkv = jnp.dot(x, wqkv_ref[l],
                      preferred_element_type=jnp.float32) + bqkv_ref[l]
        q = qkv[:, 0 * H:1 * H]
        k = qkv[:, 1 * H:2 * H]
        v = qkv[:, 2 * H:3 * H]

        # per-head attention (static loop; 2-D dots lower robustly at HD=8)
        ctx_heads = []
        for h in range(NH):
            sl = slice(h * HD, (h + 1) * HD)
            qh, kh, vh = q[:, sl], k[:, sl], v[:, sl]
            s = jnp.einsum('qd,kd->qk', qh, kh,
                           preferred_element_type=jnp.float32) * scale + bias
            s = s - jnp.max(s, axis=-1, keepdims=True)
            p = jnp.exp(s)
            p = p * pl.reciprocal(jnp.sum(p, axis=-1, keepdims=True), approx=True)
            ctx_heads.append(jnp.dot(p, vh, preferred_element_type=jnp.float32))
        ctx = jnp.concatenate(ctx_heads, axis=-1)          # (S, H)

        attn_out = jnp.dot(ctx, wo_ref[l],
                           preferred_element_type=jnp.float32) + bo_ref[l]
        x1 = _layer_norm(x + attn_out, ln1g_ref[l], ln1b_ref[l])

        hmid = jnp.dot(x1, w1_ref[l],
                       preferred_element_type=jnp.float32) + b1_ref[l]
        # TODO(synk): HF BERT default is exact (erf) gelu; tanh approximation
        # used here differs by ~1e-3 relative.
        hmid = jax.nn.gelu(hmid, approximate=True)
        ffn_out = jnp.dot(hmid, w2_ref[l],
                          preferred_element_type=jnp.float32) + b2_ref[l]
        x = _layer_norm(x1 + ffn_out, ln2g_ref[l], ln2b_ref[l])

    # ---- lane-dense token-embedding store: (S, H) -> (1, S*H) row ----
    tok_ref[0] = jnp.concatenate([x[s:s + 1, :] for s in range(S)], axis=-1)

    # ---- pooler: tanh(W_p @ h_[CLS] + b_p) ----
    cls = jnp.tanh(jnp.dot(x[0:1, :], wp_ref[...],
                           preferred_element_type=jnp.float32) + bp_ref[...])

    # ---- masked mean pooling: (mask @ tok) / clamp(sum(mask), 1e-9) ----
    sum_emb = jnp.dot(mask, x, preferred_element_type=jnp.float32)   # (1, H)
    sum_mask = jnp.maximum(jnp.sum(mask, axis=-1, keepdims=True), 1e-9)
    mp = sum_emb * pl.reciprocal(sum_mask, approx=True)

    # pack cls | mp | zero-pad into a single 128-lane slab (unmasked store)
    pooled_ref[0] = jnp.concatenate(
        [cls, mp, jnp.zeros((1, 2 * H), jnp.float32)], axis=-1)


def fused_rep_encoder(x, mask_b1s, stk, wp, bp):
    """x: (B,S,H) f32, mask_b1s: (B,1,S) f32, stk: dict of stacked layer weights."""
    layer_full = lambda shape: pl.BlockSpec(shape, lambda b: (0,) * len(shape))

    grid_spec = pltpu.PrefetchScalarGridSpec(
        num_scalar_prefetch=0,
        grid=(B,),
        in_specs=[
            pl.BlockSpec((1, S, H), lambda b: (b, 0, 0)),   # x (per-batch block)
            pl.BlockSpec((1, 1, S), lambda b: (b, 0, 0)),   # mask
            layer_full((NLAYERS, H, 3 * H)),                # wqkv
            layer_full((NLAYERS, 1, 3 * H)),                # bqkv
            layer_full((NLAYERS, H, H)),                    # wo
            layer_full((NLAYERS, 1, H)),                    # bo
            layer_full((NLAYERS, 1, H)),                    # ln1 gamma
            layer_full((NLAYERS, 1, H)),                    # ln1 beta
            layer_full((NLAYERS, H, I)),                    # w1
            layer_full((NLAYERS, 1, I)),                    # b1
            layer_full((NLAYERS, I, H)),                    # w2
            layer_full((NLAYERS, 1, H)),                    # b2
            layer_full((NLAYERS, 1, H)),                    # ln2 gamma
            layer_full((NLAYERS, 1, H)),                    # ln2 beta
            layer_full((H, H)),                             # pooler W
            layer_full((1, H)),                             # pooler b
        ],
        out_specs=(
            pl.BlockSpec((1, 1, S * H), lambda b: (b, 0, 0)),   # token slab (256 lanes)
            pl.BlockSpec((1, 1, 4 * H), lambda b: (b, 0, 0)),   # cls|mp|pad (128 lanes)
        ),
    )

    return pl.pallas_call(
        fused_rep_encoder_kernel,
        out_shape=(jax.ShapeDtypeStruct((B, 1, S * H), jnp.float32),
                   jax.ShapeDtypeStruct((B, 1, 4 * H), jnp.float32)),
        grid_spec=grid_spec,
        compiler_params=pltpu.CompilerParams(
            dimension_semantics=("parallel",)),       # v7x: one batch elem per TC
    )(x, mask_b1s,
      stk["wqkv"], stk["bqkv"], stk["wo"], stk["bo"],
      stk["ln1g"], stk["ln1b"], stk["w1"], stk["b1"],
      stk["w2"], stk["b2"], stk["ln2g"], stk["ln2b"],
      wp, bp)


# ---------------------------------------------------------------------------
# Parameters (deterministic, synthetic), layer weights stacked over NLAYERS
# ---------------------------------------------------------------------------
def init_params(key):
    keys = iter(jax.random.split(key, 4 + NLAYERS * 4 + 1))

    def w(shape):
        return jax.random.normal(next(keys), shape, jnp.float32) * 0.02

    emb = {
        "word": w((VOCAB, H)),
        "pos":  w((S, H)),
        "type": w((2, H)),
        "ln_g": jnp.ones((1, H), jnp.float32),
        "ln_b": jnp.zeros((1, H), jnp.float32),
    }

    wqkv, wo, w1, w2 = [], [], [], []
    for _ in range(NLAYERS):
        wqkv.append(w((H, 3 * H)))
        wo.append(w((H, H)))
        w1.append(w((H, I)))
        w2.append(w((I, H)))

    stacked = {
        "wqkv": jnp.stack(wqkv),
        "bqkv": jnp.zeros((NLAYERS, 1, 3 * H), jnp.float32),
        "wo":   jnp.stack(wo),
        "bo":   jnp.zeros((NLAYERS, 1, H), jnp.float32),
        "ln1g": jnp.ones((NLAYERS, 1, H), jnp.float32),
        "ln1b": jnp.zeros((NLAYERS, 1, H), jnp.float32),
        "w1":   jnp.stack(w1),
        "b1":   jnp.zeros((NLAYERS, 1, I), jnp.float32),
        "w2":   jnp.stack(w2),
        "b2":   jnp.zeros((NLAYERS, 1, H), jnp.float32),
        "ln2g": jnp.ones((NLAYERS, 1, H), jnp.float32),
        "ln2b": jnp.zeros((NLAYERS, 1, H), jnp.float32),
    }

    wp = w((H, H))
    bp = jnp.zeros((1, H), jnp.float32)
    return {"emb": emb, "stacked": stacked, "pooler": (wp, bp)}


# ---------------------------------------------------------------------------
# Forward pass (mirrors RepEncoder.forward)
# ---------------------------------------------------------------------------
def rep_encoder_forward(input_ids, token_type_ids, attention_mask, params):
    emb = params["emb"]
    # embedding lookup is a gather -> plain-JAX glue; trivial LN glue too.
    x = (jnp.take(emb["word"], input_ids, axis=0)
         + emb["pos"][None, :, :]
         + jnp.take(emb["type"], token_type_ids, axis=0))
    x = _layer_norm(x, emb["ln_g"], emb["ln_b"])

    mask_f = attention_mask.astype(jnp.float32).reshape(B, 1, S)
    wp, bp = params["pooler"]

    tok_flat, pooled = fused_rep_encoder(x, mask_f, params["stacked"], wp, bp)

    token_embeddings = tok_flat.reshape(B, S, H)       # outputs[0]
    cls_embeddings = pooled[:, 0, :H]                  # outputs[1] (pooler)
    mp_embeddings = pooled[:, 0, H:2 * H]              # masked mean pooling
    return cls_embeddings, mp_embeddings, token_embeddings


if __name__ == "__main__":
    key = jax.random.PRNGKey(0)
    pkey, ikey = jax.random.split(key)
    params = init_params(pkey)

    input_ids = jax.random.randint(ikey, (B, S), 0, VOCAB, dtype=jnp.int32)
    token_type_ids = jnp.zeros((B, S), jnp.int32)
    attention_mask = jnp.array([[1, 1, 1, 1, 1, 1, 1, 1],
                                [1, 1, 1, 1, 1, 0, 0, 0]], jnp.float32)

    cls_emb, mp_emb, tok_emb = rep_encoder_forward(
        input_ids, token_type_ids, attention_mask, params)
    jax.block_until_ready((cls_emb, mp_emb, tok_emb))

    assert cls_emb.shape == (B, H)
    assert mp_emb.shape == (B, H)
    assert tok_emb.shape == (B, S, H)
    assert bool(jnp.all(jnp.isfinite(cls_emb)))
    assert bool(jnp.all(jnp.isfinite(mp_emb)))
    assert bool(jnp.all(jnp.isfinite(tok_emb)))

    # consistency checks against the returned token embeddings (plain JAX)
    m = attention_mask[..., None]
    mp_ref = (tok_emb * m).sum(1) / jnp.maximum(m.sum(1), 1e-9)
    assert bool(jnp.allclose(mp_emb, mp_ref, atol=1e-2, rtol=1e-2))

    wp, bp = params["pooler"]
    cls_ref = jnp.tanh(tok_emb[:, 0, :] @ wp + bp)
    assert bool(jnp.allclose(cls_emb, cls_ref, atol=1e-2, rtol=1e-2))

    print("KERNEL_OK")
</pallas_src>

<mosaic_0001>
module attributes {stable_mosaic.version = 11 : i64} {
  func.func @fused_rep_encoder_kernel(%arg0: i32, %arg1: memref<1x8x32xf32, #tpu.memory_space<vmem>>, %arg2: memref<1x1x8xf32, #tpu.memory_space<vmem>>, %arg3: memref<2x32x96xf32, #tpu.memory_space<vmem>>, %arg4: memref<2x1x96xf32, #tpu.memory_space<vmem>>, %arg5: memref<2x32x32xf32, #tpu.memory_space<vmem>>, %arg6: memref<2x1x32xf32, #tpu.memory_space<vmem>>, %arg7: memref<2x1x32xf32, #tpu.memory_space<vmem>>, %arg8: memref<2x1x32xf32, #tpu.memory_space<vmem>>, %arg9: memref<2x32x64xf32, #tpu.memory_space<vmem>>, %arg10: memref<2x1x64xf32, #tpu.memory_space<vmem>>, %arg11: memref<2x64x32xf32, #tpu.memory_space<vmem>>, %arg12: memref<2x1x32xf32, #tpu.memory_space<vmem>>, %arg13: memref<2x1x32xf32, #tpu.memory_space<vmem>>, %arg14: memref<2x1x32xf32, #tpu.memory_space<vmem>>, %arg15: memref<32x32xf32, #tpu.memory_space<vmem>>, %arg16: memref<1x32xf32, #tpu.memory_space<vmem>>, %arg17: memref<1x1x256xf32, #tpu.memory_space<vmem>>, %arg18: memref<1x1x128xf32, #tpu.memory_space<vmem>>) attributes {dimension_semantics = [#tpu.dimension_semantics<parallel>], iteration_bounds = array<i64: 2>, scalar_prefetch = 0 : i64, scratch_operands = 0 : i64, tpu.core_type = #tpu.core_type<tc>, window_params = [{transform_indices = @transform_0, window_bounds = array<i64: 1, 8, 32>}, {transform_indices = @transform_1, window_bounds = array<i64: 1, 1, 8>}, {pipeline_mode = #tpu.pipeline_mode<synchronous>, transform_indices = @transform_2, window_bounds = array<i64: 2, 32, 96>}, {pipeline_mode = #tpu.pipeline_mode<synchronous>, transform_indices = @transform_3, window_bounds = array<i64: 2, 1, 96>}, {pipeline_mode = #tpu.pipeline_mode<synchronous>, transform_indices = @transform_4, window_bounds = array<i64: 2, 32, 32>}, {pipeline_mode = #tpu.pipeline_mode<synchronous>, transform_indices = @transform_5, window_bounds = array<i64: 2, 1, 32>}, {pipeline_mode = #tpu.pipeline_mode<synchronous>, transform_indices = @transform_6, window_bounds = array<i64: 2, 1, 32>}, {pipeline_mode = #tpu.pipeline_mode<synchronous>, transform_indices = @transform_7, window_bounds = array<i64: 2, 1, 32>}, {pipeline_mode = #tpu.pipeline_mode<synchronous>, transform_indices = @transform_8, window_bounds = array<i64: 2, 32, 64>}, {pipeline_mode = #tpu.pipeline_mode<synchronous>, transform_indices = @transform_9, window_bounds = array<i64: 2, 1, 64>}, {pipeline_mode = #tpu.pipeline_mode<synchronous>, transform_indices = @transform_10, window_bounds = array<i64: 2, 64, 32>}, {pipeline_mode = #tpu.pipeline_mode<synchronous>, transform_indices = @transform_11, window_bounds = array<i64: 2, 1, 32>}, {pipeline_mode = #tpu.pipeline_mode<synchronous>, transform_indices = @transform_12, window_bounds = array<i64: 2, 1, 32>}, {pipeline_mode = #tpu.pipeline_mode<synchronous>, transform_indices = @transform_13, window_bounds = array<i64: 2, 1, 32>}, {pipeline_mode = #tpu.pipeline_mode<synchronous>, transform_indices = @transform_14, window_bounds = array<i64: 32, 32>}, {pipeline_mode = #tpu.pipeline_mode<synchronous>, transform_indices = @transform_15, window_bounds = array<i64: 1, 32>}, {transform_indices = @transform_16, window_bounds = array<i64: 1, 1, 256>}, {transform_indices = @transform_17, window_bounds = array<i64: 1, 1, 128>}]} {
    %c0 = arith.constant 0 : index
    %c0_0 = arith.constant 0 : index
    %c0_1 = arith.constant 0 : index
    %0 = vector.load %arg1[%c0, %c0_0, %c0_1] : memref<1x8x32xf32, #tpu.memory_space<vmem>>, vector<1x8x32xf32>
    %1 = vector.shape_cast %0 : vector<1x8x32xf32> to vector<8x32xf32>
    %c0_2 = arith.constant 0 : index
    %c0_3 = arith.constant 0 : index
    %c0_4 = arith.constant 0 : index
    %2 = vector.load %arg2[%c0_2, %c0_3, %c0_4] : memref<1x1x8xf32, #tpu.memory_space<vmem>>, vector<1x1x8xf32>
    %3 = vector.shape_cast %2 : vector<1x1x8xf32> to vector<1x8xf32>
    %cst = arith.constant 1.000000e+00 : f32
    %4 = vector.broadcast %cst : f32 to vector<1x8xf32>
    %5 = arith.subf %4, %3 : vector<1x8xf32>
    %cst_5 = arith.constant -1.000000e+09 : f32
    %6 = vector.broadcast %cst_5 : f32 to vector<1x8xf32>
    %7 = arith.mulf %5, %6 : vector<1x8xf32>
    %c0_6 = arith.constant 0 : index
    %c0_7 = arith.constant 0 : index
    %c0_8 = arith.constant 0 : index
    %8 = vector.load %arg3[%c0_6, %c0_7, %c0_8] : memref<2x32x96xf32, #tpu.memory_space<vmem>>, vector<1x32x96xf32>
    %9 = vector.shape_cast %8 : vector<1x32x96xf32> to vector<32x96xf32>
    %cst_9 = arith.constant dense<0.000000e+00> : vector<8x96xf32>
    %10 = tpu.matmul %1, %9, %cst_9 {dimension_numbers = #tpu.dot_dimension_numbers<[1], [0], [0], [1], [0, 0, 1, 1], [], []>} : vector<8x32xf32>, vector<32x96xf32>, vector<8x96xf32> -> vector<8x96xf32>
    %c0_10 = arith.constant 0 : index
    %c0_11 = arith.constant 0 : index
    %c0_12 = arith.constant 0 : index
    %11 = vector.load %arg4[%c0_10, %c0_11, %c0_12] : memref<2x1x96xf32, #tpu.memory_space<vmem>>, vector<1x1x96xf32>
    %12 = vector.shape_cast %11 : vector<1x1x96xf32> to vector<1x96xf32>
    %13 = vector.broadcast %12 : vector<1x96xf32> to vector<8x96xf32>
    %14 = arith.addf %10, %13 : vector<8x96xf32>
    %15 = vector.extract_strided_slice %14 {offsets = [0, 0], sizes = [8, 32], strides = [1, 1]} : vector<8x96xf32> to vector<8x32xf32>
    %16 = vector.extract_strided_slice %14 {offsets = [0, 32], sizes = [8, 32], strides = [1, 1]} : vector<8x96xf32> to vector<8x32xf32>
    %17 = vector.extract_strided_slice %14 {offsets = [0, 64], sizes = [8, 32], strides = [1, 1]} : vector<8x96xf32> to vector<8x32xf32>
    %18 = vector.extract_strided_slice %15 {offsets = [0, 0], sizes = [8, 8], strides = [1, 1]} : vector<8x32xf32> to vector<8x8xf32>
    %19 = vector.extract_strided_slice %16 {offsets = [0, 0], sizes = [8, 8], strides = [1, 1]} : vector<8x32xf32> to vector<8x8xf32>
    %20 = vector.extract_strided_slice %17 {offsets = [0, 0], sizes = [8, 8], strides = [1, 1]} : vector<8x32xf32> to vector<8x8xf32>
    "tpu.trace_start"() <{level = 10 : i32, message = "qd,kd->qk"}> : () -> ()
    %cst_13 = arith.constant dense<0.000000e+00> : vector<8x8xf32>
    %21 = tpu.matmul %18, %19, %cst_13 {dimension_numbers = #tpu.dot_dimension_numbers<[1], [1], [0], [0], [0, 0, 1, 0], [], []>} : vector<8x8xf32>, vector<8x8xf32>, vector<8x8xf32> -> vector<8x8xf32>
    "tpu.trace_stop"() : () -> ()
    %cst_14 = arith.constant 0.353553385 : f32
    %22 = vector.broadcast %cst_14 : f32 to vector<8x8xf32>
    %23 = arith.mulf %21, %22 : vector<8x8xf32>
    %24 = vector.broadcast %7 : vector<1x8xf32> to vector<8x8xf32>
    %25 = arith.addf %23, %24 : vector<8x8xf32>
    %cst_15 = arith.constant dense<0xFF800000> : vector<8xf32>
    %26 = vector.multi_reduction <maximumf>, %25, %cst_15 [1] : vector<8x8xf32> to vector<8xf32>
    %27 = vector.shape_cast %26 : vector<8xf32> to vector<8x1xf32>
    %28 = vector.broadcast %27 : vector<8x1xf32> to vector<8x8xf32>
    %29 = arith.subf %25, %28 : vector<8x8xf32>
    %30 = math.exp %29 : vector<8x8xf32>
    %cst_16 = arith.constant dense<0.000000e+00> : vector<8xf32>
    %31 = vector.multi_reduction <add>, %30, %cst_16 [1] : vector<8x8xf32> to vector<8xf32>
    %32 = vector.shape_cast %31 : vector<8xf32> to vector<8x1xf32>
    %33 = tpu.reciprocal %32 {approx = true} : vector<8x1xf32> -> vector<8x1xf32>
    %34 = vector.broadcast %33 : vector<8x1xf32> to vector<8x8xf32>
    %35 = arith.mulf %30, %34 : vector<8x8xf32>
    %cst_17 = arith.constant dense<0.000000e+00> : vector<8x8xf32>
    %36 = tpu.matmul %35, %20, %cst_17 {dimension_numbers = #tpu.dot_dimension_numbers<[1], [0], [0], [1], [0, 0, 1, 1], [], []>} : vector<8x8xf32>, vector<8x8xf32>, vector<8x8xf32> -> vector<8x8xf32>
    %37 = vector.extract_strided_slice %15 {offsets = [0, 8], sizes = [8, 8], strides = [1, 1]} : vector<8x32xf32> to vector<8x8xf32>
    %38 = vector.extract_strided_slice %16 {offsets = [0, 8], sizes = [8, 8], strides = [1, 1]} : vector<8x32xf32> to vector<8x8xf32>
    %39 = vector.extract_strided_slice %17 {offsets = [0, 8], sizes = [8, 8], strides = [1, 1]} : vector<8x32xf32> to vector<8x8xf32>
    "tpu.trace_start"() <{level = 10 : i32, message = "qd,kd->qk"}> : () -> ()
    %cst_18 = arith.constant dense<0.000000e+00> : vector<8x8xf32>
    %40 = tpu.matmul %37, %38, %cst_18 {dimension_numbers = #tpu.dot_dimension_numbers<[1], [1], [0], [0], [0, 0, 1, 0], [], []>} : vector<8x8xf32>, vector<8x8xf32>, vector<8x8xf32> -> vector<8x8xf32>
    "tpu.trace_stop"() : () -> ()
    %cst_19 = arith.constant 0.353553385 : f32
    %41 = vector.broadcast %cst_19 : f32 to vector<8x8xf32>
    %42 = arith.mulf %40, %41 : vector<8x8xf32>
    %43 = vector.broadcast %7 : vector<1x8xf32> to vector<8x8xf32>
    %44 = arith.addf %42, %43 : vector<8x8xf32>
    %cst_20 = arith.constant dense<0xFF800000> : vector<8xf32>
    %45 = vector.multi_reduction <maximumf>, %44, %cst_20 [1] : vector<8x8xf32> to vector<8xf32>
    %46 = vector.shape_cast %45 : vector<8xf32> to vector<8x1xf32>
    %47 = vector.broadcast %46 : vector<8x1xf32> to vector<8x8xf32>
    %48 = arith.subf %44, %47 : vector<8x8xf32>
    %49 = math.exp %48 : vector<8x8xf32>
    %cst_21 = arith.constant dense<0.000000e+00> : vector<8xf32>
    %50 = vector.multi_reduction <add>, %49, %cst_21 [1] : vector<8x8xf32> to vector<8xf32>
    %51 = vector.shape_cast %50 : vector<8xf32> to vector<8x1xf32>
    %52 = tpu.reciprocal %51 {approx = true} : vector<8x1xf32> -> vector<8x1xf32>
    %53 = vector.broadcast %52 : vector<8x1xf32> to vector<8x8xf32>
    %54 = arith.mulf %49, %53 : vector<8x8xf32>
    %cst_22 = arith.constant dense<0.000000e+00> : vector<8x8xf32>
    %55 = tpu.matmul %54, %39, %cst_22 {dimension_numbers = #tpu.dot_dimension_numbers<[1], [0], [0], [1], [0, 0, 1, 1], [], []>} : vector<8x8xf32>, vector<8x8xf32>, vector<8x8xf32> -> vector<8x8xf32>
    %56 = vector.extract_strided_slice %15 {offsets = [0, 16], sizes = [8, 8], strides = [1, 1]} : vector<8x32xf32> to vector<8x8xf32>
    %57 = vector.extract_strided_slice %16 {offsets = [0, 16], sizes = [8, 8], strides = [1, 1]} : vector<8x32xf32> to vector<8x8xf32>
    %58 = vector.extract_strided_slice %17 {offsets = [0, 16], sizes = [8, 8], strides = [1, 1]} : vector<8x32xf32> to vector<8x8xf32>
    "tpu.trace_start"() <{level = 10 : i32, message = "qd,kd->qk"}> : () -> ()
    %cst_23 = arith.constant dense<0.000000e+00> : vector<8x8xf32>
    %59 = tpu.matmul %56, %57, %cst_23 {dimension_numbers = #tpu.dot_dimension_numbers<[1], [1], [0], [0], [0, 0, 1, 0], [], []>} : vector<8x8xf32>, vector<8x8xf32>, vector<8x8xf32> -> vector<8x8xf32>
    "tpu.trace_stop"() : () -> ()
    %cst_24 = arith.constant 0.353553385 : f32
    %60 = vector.broadcast %cst_24 : f32 to vector<8x8xf32>
    %61 = arith.mulf %59, %60 : vector<8x8xf32>
    %62 = vector.broadcast %7 : vector<1x8xf32> to vector<8x8xf32>
    %63 = arith.addf %61, %62 : vector<8x8xf32>
    %cst_25 = arith.constant dense<0xFF800000> : vector<8xf32>
    %64 = vector.multi_reduction <maximumf>, %63, %cst_25 [1] : vector<8x8xf32> to vector<8xf32>
    %65 = vector.shape_cast %64 : vector<8xf32> to vector<8x1xf32>
    %66 = vector.broadcast %65 : vector<8x1xf32> to vector<8x8xf32>
    %67 = arith.subf %63, %66 : vector<8x8xf32>
    %68 = math.exp %67 : vector<8x8xf32>
    %cst_26 = arith.constant dense<0.000000e+00> : vector<8xf32>
    %69 = vector.multi_reduction <add>, %68, %cst_26 [1] : vector<8x8xf32> to vector<8xf32>
    %70 = vector.shape_cast %69 : vector<8xf32> to vector<8x1xf32>
    %71 = tpu.reciprocal %70 {approx = true} : vector<8x1xf32> -> vector<8x1xf32>
    %72 = vector.broadcast %71 : vector<8x1xf32> to vector<8x8xf32>
    %73 = arith.mulf %68, %72 : vector<8x8xf32>
    %cst_27 = arith.constant dense<0.000000e+00> : vector<8x8xf32>
    %74 = tpu.matmul %73, %58, %cst_27 {dimension_numbers = #tpu.dot_dimension_numbers<[1], [0], [0], [1], [0, 0, 1, 1], [], []>} : vector<8x8xf32>, vector<8x8xf32>, vector<8x8xf32> -> vector<8x8xf32>
    %75 = vector.extract_strided_slice %15 {offsets = [0, 24], sizes = [8, 8], strides = [1, 1]} : vector<8x32xf32> to vector<8x8xf32>
    %76 = vector.extract_strided_slice %16 {offsets = [0, 24], sizes = [8, 8], strides = [1, 1]} : vector<8x32xf32> to vector<8x8xf32>
    %77 = vector.extract_strided_slice %17 {offsets = [0, 24], sizes = [8, 8], strides = [1, 1]} : vector<8x32xf32> to vector<8x8xf32>
    "tpu.trace_start"() <{level = 10 : i32, message = "qd,kd->qk"}> : () -> ()
    %cst_28 = arith.constant dense<0.000000e+00> : vector<8x8xf32>
    %78 = tpu.matmul %75, %76, %cst_28 {dimension_numbers = #tpu.dot_dimension_numbers<[1], [1], [0], [0], [0, 0, 1, 0], [], []>} : vector<8x8xf32>, vector<8x8xf32>, vector<8x8xf32> -> vector<8x8xf32>
    "tpu.trace_stop"() : () -> ()
    %cst_29 = arith.constant 0.353553385 : f32
    %79 = vector.broadcast %cst_29 : f32 to vector<8x8xf32>
    %80 = arith.mulf %78, %79 : vector<8x8xf32>
    %81 = vector.broadcast %7 : vector<1x8xf32> to vector<8x8xf32>
    %82 = arith.addf %80, %81 : vector<8x8xf32>
    %cst_30 = arith.constant dense<0xFF800000> : vector<8xf32>
    %83 = vector.multi_reduction <maximumf>, %82, %cst_30 [1] : vector<8x8xf32> to vector<8xf32>
    %84 = vector.shape_cast %83 : vector<8xf32> to vector<8x1xf32>
    %85 = vector.broadcast %84 : vector<8x1xf32> to vector<8x8xf32>
    %86 = arith.subf %82, %85 : vector<8x8xf32>
    %87 = math.exp %86 : vector<8x8xf32>
    %cst_31 = arith.constant dense<0.000000e+00> : vector<8xf32>
    %88 = vector.multi_reduction <add>, %87, %cst_31 [1] : vector<8x8xf32> to vector<8xf32>
    %89 = vector.shape_cast %88 : vector<8xf32> to vector<8x1xf32>
    %90 = tpu.reciprocal %89 {approx = true} : vector<8x1xf32> -> vector<8x1xf32>
    %91 = vector.broadcast %90 : vector<8x1xf32> to vector<8x8xf32>
    %92 = arith.mulf %87, %91 : vector<8x8xf32>
    %cst_32 = arith.constant dense<0.000000e+00> : vector<8x8xf32>
    %93 = tpu.matmul %92, %77, %cst_32 {dimension_numbers = #tpu.dot_dimension_numbers<[1], [0], [0], [1], [0, 0, 1, 1], [], []>} : vector<8x8xf32>, vector<8x8xf32>, vector<8x8xf32> -> vector<8x8xf32>
    %94 = tpu.concatenate %36, %55, %74, %93 in 1 : vector<8x8xf32>, vector<8x8xf32>, vector<8x8xf32>, vector<8x8xf32> -> vector<8x32xf32>
    %c0_33 = arith.constant 0 : index
    %c0_34 = arith.constant 0 : index
    %c0_35 = arith.constant 0 : index
    %95 = vector.load %arg5[%c0_33, %c0_34, %c0_35] : memref<2x32x32xf32, #tpu.memory_space<vmem>>, vector<1x32x32xf32>
    %96 = vector.shape_cast %95 : vector<1x32x32xf32> to vector<32x32xf32>
    %cst_36 = arith.constant dense<0.000000e+00> : vector<8x32xf32>
    %97 = tpu.matmul %94, %96, %cst_36 {dimension_numbers = #tpu.dot_dimension_numbers<[1], [0], [0], [1], [0, 0, 1, 1], [], []>} : vector<8x32xf32>, vector<32x32xf32>, vector<8x32xf32> -> vector<8x32xf32>
    %c0_37 = arith.constant 0 : index
    %c0_38 = arith.constant 0 : index
    %c0_39 = arith.constant 0 : index
    %98 = vector.load %arg6[%c0_37, %c0_38, %c0_39] : memref<2x1x32xf32, #tpu.memory_space<vmem>>, vector<1x1x32xf32>
    %99 = vector.shape_cast %98 : vector<1x1x32xf32> to vector<1x32xf32>
    %100 = vector.broadcast %99 : vector<1x32xf32> to vector<8x32xf32>
    %101 = arith.addf %97, %100 : vector<8x32xf32>
    %102 = arith.addf %1, %101 : vector<8x32xf32>
    %c0_40 = arith.constant 0 : index
    %c0_41 = arith.constant 0 : index
    %c0_42 = arith.constant 0 : index
    %103 = vector.load %arg7[%c0_40, %c0_41, %c0_42] : memref<2x1x32xf32, #tpu.memory_space<vmem>>, vector<1x1x32xf32>
    %104 = vector.shape_cast %103 : vector<1x1x32xf32> to vector<1x32xf32>
    %c0_43 = arith.constant 0 : index
    %c0_44 = arith.constant 0 : index
    %c0_45 = arith.constant 0 : index
    %105 = vector.load %arg8[%c0_43, %c0_44, %c0_45] : memref<2x1x32xf32, #tpu.memory_space<vmem>>, vector<1x1x32xf32>
    %106 = vector.shape_cast %105 : vector<1x1x32xf32> to vector<1x32xf32>
    %cst_46 = arith.constant dense<0.000000e+00> : vector<8xf32>
    %107 = vector.multi_reduction <add>, %102, %cst_46 [1] : vector<8x32xf32> to vector<8xf32>
    %108 = vector.shape_cast %107 : vector<8xf32> to vector<8x1xf32>
    %cst_47 = arith.constant 3.200000e+01 : f32
    %109 = vector.broadcast %cst_47 : f32 to vector<8x1xf32>
    %110 = arith.divf %108, %109 : vector<8x1xf32>
    %111 = vector.broadcast %110 : vector<8x1xf32> to vector<8x32xf32>
    %112 = arith.subf %102, %111 : vector<8x32xf32>
    %113 = arith.mulf %112, %112 : vector<8x32xf32>
    %cst_48 = arith.constant dense<0.000000e+00> : vector<8xf32>
    %114 = vector.multi_reduction <add>, %113, %cst_48 [1] : vector<8x32xf32> to vector<8xf32>
    %115 = vector.shape_cast %114 : vector<8xf32> to vector<8x1xf32>
    %cst_49 = arith.constant 3.200000e+01 : f32
    %116 = vector.broadcast %cst_49 : f32 to vector<8x1xf32>
    %117 = arith.divf %115, %116 : vector<8x1xf32>
    %118 = vector.broadcast %110 : vector<8x1xf32> to vector<8x32xf32>
    %119 = arith.subf %102, %118 : vector<8x32xf32>
    %cst_50 = arith.constant 9.99999996E-13 : f32
    %120 = vector.broadcast %cst_50 : f32 to vector<8x1xf32>
    %121 = arith.addf %117, %120 : vector<8x1xf32>
    %122 = math.rsqrt %121 : vector<8x1xf32>
    %123 = vector.broadcast %122 : vector<8x1xf32> to vector<8x32xf32>
    %124 = arith.mulf %119, %123 : vector<8x32xf32>
    %125 = vector.broadcast %104 : vector<1x32xf32> to vector<8x32xf32>
    %126 = arith.mulf %124, %125 : vector<8x32xf32>
    %127 = vector.broadcast %106 : vector<1x32xf32> to vector<8x32xf32>
    %128 = arith.addf %126, %127 : vector<8x32xf32>
    %c0_51 = arith.constant 0 : index
    %c0_52 = arith.constant 0 : index
    %c0_53 = arith.constant 0 : index
    %129 = vector.load %arg9[%c0_51, %c0_52, %c0_53] : memref<2x32x64xf32, #tpu.memory_space<vmem>>, vector<1x32x64xf32>
    %130 = vector.shape_cast %129 : vector<1x32x64xf32> to vector<32x64xf32>
    %cst_54 = arith.constant dense<0.000000e+00> : vector<8x64xf32>
    %131 = tpu.matmul %128, %130, %cst_54 {dimension_numbers = #tpu.dot_dimension_numbers<[1], [0], [0], [1], [0, 0, 1, 1], [], []>} : vector<8x32xf32>, vector<32x64xf32>, vector<8x64xf32> -> vector<8x64xf32>
    %c0_55 = arith.constant 0 : index
    %c0_56 = arith.constant 0 : index
    %c0_57 = arith.constant 0 : index
    %132 = vector.load %arg10[%c0_55, %c0_56, %c0_57] : memref<2x1x64xf32, #tpu.memory_space<vmem>>, vector<1x1x64xf32>
    %133 = vector.shape_cast %132 : vector<1x1x64xf32> to vector<1x64xf32>
    %134 = vector.broadcast %133 : vector<1x64xf32> to vector<8x64xf32>
    %135 = arith.addf %131, %134 : vector<8x64xf32>
    %136 = arith.mulf %135, %135 : vector<8x64xf32>
    %137 = arith.mulf %135, %136 : vector<8x64xf32>
    %cst_58 = arith.constant 4.471500e-02 : f32
    %138 = vector.broadcast %cst_58 : f32 to vector<8x64xf32>
    %139 = arith.mulf %138, %137 : vector<8x64xf32>
    %140 = arith.addf %135, %139 : vector<8x64xf32>
    %cst_59 = arith.constant 0.797884583 : f32
    %141 = vector.broadcast %cst_59 : f32 to vector<8x64xf32>
    %142 = arith.mulf %141, %140 : vector<8x64xf32>
    %143 = math.tanh %142 : vector<8x64xf32>
    %cst_60 = arith.constant 1.000000e+00 : f32
    %144 = vector.broadcast %cst_60 : f32 to vector<8x64xf32>
    %145 = arith.addf %144, %143 : vector<8x64xf32>
    %cst_61 = arith.constant 5.000000e-01 : f32
    %146 = vector.broadcast %cst_61 : f32 to vector<8x64xf32>
    %147 = arith.mulf %146, %145 : vector<8x64xf32>
    %148 = arith.mulf %135, %147 : vector<8x64xf32>
    %c0_62 = arith.constant 0 : index
    %c0_63 = arith.constant 0 : index
    %c0_64 = arith.constant 0 : index
    %149 = vector.load %arg11[%c0_62, %c0_63, %c0_64] : memref<2x64x32xf32, #tpu.memory_space<vmem>>, vector<1x64x32xf32>
    %150 = vector.shape_cast %149 : vector<1x64x32xf32> to vector<64x32xf32>
    %cst_65 = arith.constant dense<0.000000e+00> : vector<8x32xf32>
    %151 = tpu.matmul %148, %150, %cst_65 {dimension_numbers = #tpu.dot_dimension_numbers<[1], [0], [0], [1], [0, 0, 1, 1], [], []>} : vector<8x64xf32>, vector<64x32xf32>, vector<8x32xf32> -> vector<8x32xf32>
    %c0_66 = arith.constant 0 : index
    %c0_67 = arith.constant 0 : index
    %c0_68 = arith.constant 0 : index
    %152 = vector.load %arg12[%c0_66, %c0_67, %c0_68] : memref<2x1x32xf32, #tpu.memory_space<vmem>>, vector<1x1x32xf32>
    %153 = vector.shape_cast %152 : vector<1x1x32xf32> to vector<1x32xf32>
    %154 = vector.broadcast %153 : vector<1x32xf32> to vector<8x32xf32>
    %155 = arith.addf %151, %154 : vector<8x32xf32>
    %156 = arith.addf %128, %155 : vector<8x32xf32>
    %c0_69 = arith.constant 0 : index
    %c0_70 = arith.constant 0 : index
    %c0_71 = arith.constant 0 : index
    %157 = vector.load %arg13[%c0_69, %c0_70, %c0_71] : memref<2x1x32xf32, #tpu.memory_space<vmem>>, vector<1x1x32xf32>
    %158 = vector.shape_cast %157 : vector<1x1x32xf32> to vector<1x32xf32>
    %c0_72 = arith.constant 0 : index
    %c0_73 = arith.constant 0 : index
    %c0_74 = arith.constant 0 : index
    %159 = vector.load %arg14[%c0_72, %c0_73, %c0_74] : memref<2x1x32xf32, #tpu.memory_space<vmem>>, vector<1x1x32xf32>
    %160 = vector.shape_cast %159 : vector<1x1x32xf32> to vector<1x32xf32>
    %cst_75 = arith.constant dense<0.000000e+00> : vector<8xf32>
    %161 = vector.multi_reduction <add>, %156, %cst_75 [1] : vector<8x32xf32> to vector<8xf32>
    %162 = vector.shape_cast %161 : vector<8xf32> to vector<8x1xf32>
    %cst_76 = arith.constant 3.200000e+01 : f32
    %163 = vector.broadcast %cst_76 : f32 to vector<8x1xf32>
    %164 = arith.divf %162, %163 : vector<8x1xf32>
    %165 = vector.broadcast %164 : vector<8x1xf32> to vector<8x32xf32>
    %166 = arith.subf %156, %165 : vector<8x32xf32>
    %167 = arith.mulf %166, %166 : vector<8x32xf32>
    %cst_77 = arith.constant dense<0.000000e+00> : vector<8xf32>
    %168 = vector.multi_reduction <add>, %167, %cst_77 [1] : vector<8x32xf32> to vector<8xf32>
    %169 = vector.shape_cast %168 : vector<8xf32> to vector<8x1xf32>
    %cst_78 = arith.constant 3.200000e+01 : f32
    %170 = vector.broadcast %cst_78 : f32 to vector<8x1xf32>
    %171 = arith.divf %169, %170 : vector<8x1xf32>
    %172 = vector.broadcast %164 : vector<8x1xf32> to vector<8x32xf32>
    %173 = arith.subf %156, %172 : vector<8x32xf32>
    %cst_79 = arith.constant 9.99999996E-13 : f32
    %174 = vector.broadcast %cst_79 : f32 to vector<8x1xf32>
    %175 = arith.addf %171, %174 : vector<8x1xf32>
    %176 = math.rsqrt %175 : vector<8x1xf32>
    %177 = vector.broadcast %176 : vector<8x1xf32> to vector<8x32xf32>
    %178 = arith.mulf %173, %177 : vector<8x32xf32>
    %179 = vector.broadcast %158 : vector<1x32xf32> to vector<8x32xf32>
    %180 = arith.mulf %178, %179 : vector<8x32xf32>
    %181 = vector.broadcast %160 : vector<1x32xf32> to vector<8x32xf32>
    %182 = arith.addf %180, %181 : vector<8x32xf32>
    %c1 = arith.constant 1 : index
    %c0_80 = arith.constant 0 : index
    %c0_81 = arith.constant 0 : index
    %183 = vector.load %arg3[%c1, %c0_80, %c0_81] : memref<2x32x96xf32, #tpu.memory_space<vmem>>, vector<1x32x96xf32>
    %184 = vector.shape_cast %183 : vector<1x32x96xf32> to vector<32x96xf32>
    %cst_82 = arith.constant dense<0.000000e+00> : vector<8x96xf32>
    %185 = tpu.matmul %182, %184, %cst_82 {dimension_numbers = #tpu.dot_dimension_numbers<[1], [0], [0], [1], [0, 0, 1, 1], [], []>} : vector<8x32xf32>, vector<32x96xf32>, vector<8x96xf32> -> vector<8x96xf32>
    %c1_83 = arith.constant 1 : index
    %c0_84 = arith.constant 0 : index
    %c0_85 = arith.constant 0 : index
    %186 = vector.load %arg4[%c1_83, %c0_84, %c0_85] : memref<2x1x96xf32, #tpu.memory_space<vmem>>, vector<1x1x96xf32>
    %187 = vector.shape_cast %186 : vector<1x1x96xf32> to vector<1x96xf32>
    %188 = vector.broadcast %187 : vector<1x96xf32> to vector<8x96xf32>
    %189 = arith.addf %185, %188 : vector<8x96xf32>
    %190 = vector.extract_strided_slice %189 {offsets = [0, 0], sizes = [8, 32], strides = [1, 1]} : vector<8x96xf32> to vector<8x32xf32>
    %191 = vector.extract_strided_slice %189 {offsets = [0, 32], sizes = [8, 32], strides = [1, 1]} : vector<8x96xf32> to vector<8x32xf32>
    %192 = vector.extract_strided_slice %189 {offsets = [0, 64], sizes = [8, 32], strides = [1, 1]} : vector<8x96xf32> to vector<8x32xf32>
    %193 = vector.extract_strided_slice %190 {offsets = [0, 0], sizes = [8, 8], strides = [1, 1]} : vector<8x32xf32> to vector<8x8xf32>
    %194 = vector.extract_strided_slice %191 {offsets = [0, 0], sizes = [8, 8], strides = [1, 1]} : vector<8x32xf32> to vector<8x8xf32>
    %195 = vector.extract_strided_slice %192 {offsets = [0, 0], sizes = [8, 8], strides = [1, 1]} : vector<8x32xf32> to vector<8x8xf32>
    "tpu.trace_start"() <{level = 10 : i32, message = "qd,kd->qk"}> : () -> ()
    %cst_86 = arith.constant dense<0.000000e+00> : vector<8x8xf32>
    %196 = tpu.matmul %193, %194, %cst_86 {dimension_numbers = #tpu.dot_dimension_numbers<[1], [1], [0], [0], [0, 0, 1, 0], [], []>} : vector<8x8xf32>, vector<8x8xf32>, vector<8x8xf32> -> vector<8x8xf32>
    "tpu.trace_stop"() : () -> ()
    %cst_87 = arith.constant 0.353553385 : f32
    %197 = vector.broadcast %cst_87 : f32 to vector<8x8xf32>
    %198 = arith.mulf %196, %197 : vector<8x8xf32>
    %199 = vector.broadcast %7 : vector<1x8xf32> to vector<8x8xf32>
    %200 = arith.addf %198, %199 : vector<8x8xf32>
    %cst_88 = arith.constant dense<0xFF800000> : vector<8xf32>
    %201 = vector.multi_reduction <maximumf>, %200, %cst_88 [1] : vector<8x8xf32> to vector<8xf32>
    %202 = vector.shape_cast %201 : vector<8xf32> to vector<8x1xf32>
    %203 = vector.broadcast %202 : vector<8x1xf32> to vector<8x8xf32>
    %204 = arith.subf %200, %203 : vector<8x8xf32>
    %205 = math.exp %204 : vector<8x8xf32>
    %cst_89 = arith.constant dense<0.000000e+00> : vector<8xf32>
    %206 = vector.multi_reduction <add>, %205, %cst_89 [1] : vector<8x8xf32> to vector<8xf32>
    %207 = vector.shape_cast %206 : vector<8xf32> to vector<8x1xf32>
    %208 = tpu.reciprocal %207 {approx = true} : vector<8x1xf32> -> vector<8x1xf32>
    %209 = vector.broadcast %208 : vector<8x1xf32> to vector<8x8xf32>
    %210 = arith.mulf %205, %209 : vector<8x8xf32>
    %cst_90 = arith.constant dense<0.000000e+00> : vector<8x8xf32>
    %211 = tpu.matmul %210, %195, %cst_90 {dimension_numbers = #tpu.dot_dimension_numbers<[1], [0], [0], [1], [0, 0, 1, 1], [], []>} : vector<8x8xf32>, vector<8x8xf32>, vector<8x8xf32> -> vector<8x8xf32>
    %212 = vector.extract_strided_slice %190 {offsets = [0, 8], sizes = [8, 8], strides = [1, 1]} : vector<8x32xf32> to vector<8x8xf32>
    %213 = vector.extract_strided_slice %191 {offsets = [0, 8], sizes = [8, 8], strides = [1, 1]} : vector<8x32xf32> to vector<8x8xf32>
    %214 = vector.extract_strided_slice %192 {offsets = [0, 8], sizes = [8, 8], strides = [1, 1]} : vector<8x32xf32> to vector<8x8xf32>
    "tpu.trace_start"() <{level = 10 : i32, message = "qd,kd->qk"}> : () -> ()
    %cst_91 = arith.constant dense<0.000000e+00> : vector<8x8xf32>
    %215 = tpu.matmul %212, %213, %cst_91 {dimension_numbers = #tpu.dot_dimension_numbers<[1], [1], [0], [0], [0, 0, 1, 0], [], []>} : vector<8x8xf32>, vector<8x8xf32>, vector<8x8xf32> -> vector<8x8xf32>
    "tpu.trace_stop"() : () -> ()
    %cst_92 = arith.constant 0.353553385 : f32
    %216 = vector.broadcast %cst_92 : f32 to vector<8x8xf32>
    %217 = arith.mulf %215, %216 : vector<8x8xf32>
    %218 = vector.broadcast %7 : vector<1x8xf32> to vector<8x8xf32>
    %219 = arith.addf %217, %218 : vector<8x8xf32>
    %cst_93 = arith.constant dense<0xFF800000> : vector<8xf32>
    %220 = vector.multi_reduction <maximumf>, %219, %cst_93 [1] : vector<8x8xf32> to vector<8xf32>
    %221 = vector.shape_cast %220 : vector<8xf32> to vector<8x1xf32>
    %222 = vector.broadcast %221 : vector<8x1xf32> to vector<8x8xf32>
    %223 = arith.subf %219, %222 : vector<8x8xf32>
    %224 = math.exp %223 : vector<8x8xf32>
    %cst_94 = arith.constant dense<0.000000e+00> : vector<8xf32>
    %225 = vector.multi_reduction <add>, %224, %cst_94 [1] : vector<8x8xf32> to vector<8xf32>
    %226 = vector.shape_cast %225 : vector<8xf32> to vector<8x1xf32>
    %227 = tpu.reciprocal %226 {approx = true} : vector<8x1xf32> -> vector<8x1xf32>
    %228 = vector.broadcast %227 : vector<8x1xf32> to vector<8x8xf32>
    %229 = arith.mulf %224, %228 : vector<8x8xf32>
    %cst_95 = arith.constant dense<0.000000e+00> : vector<8x8xf32>
    %230 = tpu.matmul %229, %214, %cst_95 {dimension_numbers = #tpu.dot_dimension_numbers<[1], [0], [0], [1], [0, 0, 1, 1], [], []>} : vector<8x8xf32>, vector<8x8xf32>, vector<8x8xf32> -> vector<8x8xf32>
    %231 = vector.extract_strided_slice %190 {offsets = [0, 16], sizes = [8, 8], strides = [1, 1]} : vector<8x32xf32> to vector<8x8xf32>
    %232 = vector.extract_strided_slice %191 {offsets = [0, 16], sizes = [8, 8], strides = [1, 1]} : vector<8x32xf32> to vector<8x8xf32>
    %233 = vector.extract_strided_slice %192 {offsets = [0, 16], sizes = [8, 8], strides = [1, 1]} : vector<8x32xf32> to vector<8x8xf32>
    "tpu.trace_start"() <{level = 10 : i32, message = "qd,kd->qk"}> : () -> ()
    %cst_96 = arith.constant dense<0.000000e+00> : vector<8x8xf32>
    %234 = tpu.matmul %231, %232, %cst_96 {dimension_numbers = #tpu.dot_dimension_numbers<[1], [1], [0], [0], [0, 0, 1, 0], [], []>} : vector<8x8xf32>, vector<8x8xf32>, vector<8x8xf32> -> vector<8x8xf32>
    "tpu.trace_stop"() : () -> ()
    %cst_97 = arith.constant 0.353553385 : f32
    %235 = vector.broadcast %cst_97 : f32 to vector<8x8xf32>
    %236 = arith.mulf %234, %235 : vector<8x8xf32>
    %237 = vector.broadcast %7 : vector<1x8xf32> to vector<8x8xf32>
    %238 = arith.addf %236, %237 : vector<8x8xf32>
    %cst_98 = arith.constant dense<0xFF800000> : vector<8xf32>
    %239 = vector.multi_reduction <maximumf>, %238, %cst_98 [1] : vector<8x8xf32> to vector<8xf32>
    %240 = vector.shape_cast %239 : vector<8xf32> to vector<8x1xf32>
    %241 = vector.broadcast %240 : vector<8x1xf32> to vector<8x8xf32>
    %242 = arith.subf %238, %241 : vector<8x8xf32>
    %243 = math.exp %242 : vector<8x8xf32>
    %cst_99 = arith.constant dense<0.000000e+00> : vector<8xf32>
    %244 = vector.multi_reduction <add>, %243, %cst_99 [1] : vector<8x8xf32> to vector<8xf32>
    %245 = vector.shape_cast %244 : vector<8xf32> to vector<8x1xf32>
    %246 = tpu.reciprocal %245 {approx = true} : vector<8x1xf32> -> vector<8x1xf32>
    %247 = vector.broadcast %246 : vector<8x1xf32> to vector<8x8xf32>
    %248 = arith.mulf %243, %247 : vector<8x8xf32>
    %cst_100 = arith.constant dense<0.000000e+00> : vector<8x8xf32>
    %249 = tpu.matmul %248, %233, %cst_100 {dimension_numbers = #tpu.dot_dimension_numbers<[1], [0], [0], [1], [0, 0, 1, 1], [], []>} : vector<8x8xf32>, vector<8x8xf32>, vector<8x8xf32> -> vector<8x8xf32>
    %250 = vector.extract_strided_slice %190 {offsets = [0, 24], sizes = [8, 8], strides = [1, 1]} : vector<8x32xf32> to vector<8x8xf32>
    %251 = vector.extract_strided_slice %191 {offsets = [0, 24], sizes = [8, 8], strides = [1, 1]} : vector<8x32xf32> to vector<8x8xf32>
    %252 = vector.extract_strided_slice %192 {offsets = [0, 24], sizes = [8, 8], strides = [1, 1]} : vector<8x32xf32> to vector<8x8xf32>
    "tpu.trace_start"() <{level = 10 : i32, message = "qd,kd->qk"}> : () -> ()
    %cst_101 = arith.constant dense<0.000000e+00> : vector<8x8xf32>
    %253 = tpu.matmul %250, %251, %cst_101 {dimension_numbers = #tpu.dot_dimension_numbers<[1], [1], [0], [0], [0, 0, 1, 0], [], []>} : vector<8x8xf32>, vector<8x8xf32>, vector<8x8xf32> -> vector<8x8xf32>
    "tpu.trace_stop"() : () -> ()
    %cst_102 = arith.constant 0.353553385 : f32
    %254 = vector.broadcast %cst_102 : f32 to vector<8x8xf32>
    %255 = arith.mulf %253, %254 : vector<8x8xf32>
    %256 = vector.broadcast %7 : vector<1x8xf32> to vector<8x8xf32>
    %257 = arith.addf %255, %256 : vector<8x8xf32>
    %cst_103 = arith.constant dense<0xFF800000> : vector<8xf32>
    %258 = vector.multi_reduction <maximumf>, %257, %cst_103 [1] : vector<8x8xf32> to vector<8xf32>
    %259 = vector.shape_cast %258 : vector<8xf32> to vector<8x1xf32>
    %260 = vector.broadcast %259 : vector<8x1xf32> to vector<8x8xf32>
    %261 = arith.subf %257, %260 : vector<8x8xf32>
    %262 = math.exp %261 : vector<8x8xf32>
    %cst_104 = arith.constant dense<0.000000e+00> : vector<8xf32>
    %263 = vector.multi_reduction <add>, %262, %cst_104 [1] : vector<8x8xf32> to vector<8xf32>
    %264 = vector.shape_cast %263 : vector<8xf32> to vector<8x1xf32>
    %265 = tpu.reciprocal %264 {approx = true} : vector<8x1xf32> -> vector<8x1xf32>
    %266 = vector.broadcast %265 : vector<8x1xf32> to vector<8x8xf32>
    %267 = arith.mulf %262, %266 : vector<8x8xf32>
    %cst_105 = arith.constant dense<0.000000e+00> : vector<8x8xf32>
    %268 = tpu.matmul %267, %252, %cst_105 {dimension_numbers = #tpu.dot_dimension_numbers<[1], [0], [0], [1], [0, 0, 1, 1], [], []>} : vector<8x8xf32>, vector<8x8xf32>, vector<8x8xf32> -> vector<8x8xf32>
    %269 = tpu.concatenate %211, %230, %249, %268 in 1 : vector<8x8xf32>, vector<8x8xf32>, vector<8x8xf32>, vector<8x8xf32> -> vector<8x32xf32>
    %c1_106 = arith.constant 1 : index
    %c0_107 = arith.constant 0 : index
    %c0_108 = arith.constant 0 : index
    %270 = vector.load %arg5[%c1_106, %c0_107, %c0_108] : memref<2x32x32xf32, #tpu.memory_space<vmem>>, vector<1x32x32xf32>
    %271 = vector.shape_cast %270 : vector<1x32x32xf32> to vector<32x32xf32>
    %cst_109 = arith.constant dense<0.000000e+00> : vector<8x32xf32>
    %272 = tpu.matmul %269, %271, %cst_109 {dimension_numbers = #tpu.dot_dimension_numbers<[1], [0], [0], [1], [0, 0, 1, 1], [], []>} : vector<8x32xf32>, vector<32x32xf32>, vector<8x32xf32> -> vector<8x32xf32>
    %c1_110 = arith.constant 1 : index
    %c0_111 = arith.constant 0 : index
    %c0_112 = arith.constant 0 : index
    %273 = vector.load %arg6[%c1_110, %c0_111, %c0_112] : memref<2x1x32xf32, #tpu.memory_space<vmem>>, vector<1x1x32xf32>
    %274 = vector.shape_cast %273 : vector<1x1x32xf32> to vector<1x32xf32>
    %275 = vector.broadcast %274 : vector<1x32xf32> to vector<8x32xf32>
    %276 = arith.addf %272, %275 : vector<8x32xf32>
    %277 = arith.addf %182, %276 : vector<8x32xf32>
    %c1_113 = arith.constant 1 : index
    %c0_114 = arith.constant 0 : index
    %c0_115 = arith.constant 0 : index
    %278 = vector.load %arg7[%c1_113, %c0_114, %c0_115] : memref<2x1x32xf32, #tpu.memory_space<vmem>>, vector<1x1x32xf32>
    %279 = vector.shape_cast %278 : vector<1x1x32xf32> to vector<1x32xf32>
    %c1_116 = arith.constant 1 : index
    %c0_117 = arith.constant 0 : index
    %c0_118 = arith.constant 0 : index
    %280 = vector.load %arg8[%c1_116, %c0_117, %c0_118] : memref<2x1x32xf32, #tpu.memory_space<vmem>>, vector<1x1x32xf32>
    %281 = vector.shape_cast %280 : vector<1x1x32xf32> to vector<1x32xf32>
    %cst_119 = arith.constant dense<0.000000e+00> : vector<8xf32>
    %282 = vector.multi_reduction <add>, %277, %cst_119 [1] : vector<8x32xf32> to vector<8xf32>
    %283 = vector.shape_cast %282 : vector<8xf32> to vector<8x1xf32>
    %cst_120 = arith.constant 3.200000e+01 : f32
    %284 = vector.broadcast %cst_120 : f32 to vector<8x1xf32>
    %285 = arith.divf %283, %284 : vector<8x1xf32>
    %286 = vector.broadcast %285 : vector<8x1xf32> to vector<8x32xf32>
    %287 = arith.subf %277, %286 : vector<8x32xf32>
    %288 = arith.mulf %287, %287 : vector<8x32xf32>
    %cst_121 = arith.constant dense<0.000000e+00> : vector<8xf32>
    %289 = vector.multi_reduction <add>, %288, %cst_121 [1] : vector<8x32xf32> to vector<8xf32>
    %290 = vector.shape_cast %289 : vector<8xf32> to vector<8x1xf32>
    %cst_122 = arith.constant 3.200000e+01 : f32
    %291 = vector.broadcast %cst_122 : f32 to vector<8x1xf32>
    %292 = arith.divf %290, %291 : vector<8x1xf32>
    %293 = vector.broadcast %285 : vector<8x1xf32> to vector<8x32xf32>
    %294 = arith.subf %277, %293 : vector<8x32xf32>
    %cst_123 = arith.constant 9.99999996E-13 : f32
    %295 = vector.broadcast %cst_123 : f32 to vector<8x1xf32>
    %296 = arith.addf %292, %295 : vector<8x1xf32>
    %297 = math.rsqrt %296 : vector<8x1xf32>
    %298 = vector.broadcast %297 : vector<8x1xf32> to vector<8x32xf32>
    %299 = arith.mulf %294, %298 : vector<8x32xf32>
    %300 = vector.broadcast %279 : vector<1x32xf32> to vector<8x32xf32>
    %301 = arith.mulf %299, %300 : vector<8x32xf32>
    %302 = vector.broadcast %281 : vector<1x32xf32> to vector<8x32xf32>
    %303 = arith.addf %301, %302 : vector<8x32xf32>
    %c1_124 = arith.constant 1 : index
    %c0_125 = arith.constant 0 : index
    %c0_126 = arith.constant 0 : index
    %304 = vector.load %arg9[%c1_124, %c0_125, %c0_126] : memref<2x32x64xf32, #tpu.memory_space<vmem>>, vector<1x32x64xf32>
    %305 = vector.shape_cast %304 : vector<1x32x64xf32> to vector<32x64xf32>
    %cst_127 = arith.constant dense<0.000000e+00> : vector<8x64xf32>
    %306 = tpu.matmul %303, %305, %cst_127 {dimension_numbers = #tpu.dot_dimension_numbers<[1], [0], [0], [1], [0, 0, 1, 1], [], []>} : vector<8x32xf32>, vector<32x64xf32>, vector<8x64xf32> -> vector<8x64xf32>
    %c1_128 = arith.constant 1 : index
    %c0_129 = arith.constant 0 : index
    %c0_130 = arith.constant 0 : index
    %307 = vector.load %arg10[%c1_128, %c0_129, %c0_130] : memref<2x1x64xf32, #tpu.memory_space<vmem>>, vector<1x1x64xf32>
    %308 = vector.shape_cast %307 : vector<1x1x64xf32> to vector<1x64xf32>
    %309 = vector.broadcast %308 : vector<1x64xf32> to vector<8x64xf32>
    %310 = arith.addf %306, %309 : vector<8x64xf32>
    %311 = arith.mulf %310, %310 : vector<8x64xf32>
    %312 = arith.mulf %310, %311 : vector<8x64xf32>
    %cst_131 = arith.constant 4.471500e-02 : f32
    %313 = vector.broadcast %cst_131 : f32 to vector<8x64xf32>
    %314 = arith.mulf %313, %312 : vector<8x64xf32>
    %315 = arith.addf %310, %314 : vector<8x64xf32>
    %cst_132 = arith.constant 0.797884583 : f32
    %316 = vector.broadcast %cst_132 : f32 to vector<8x64xf32>
    %317 = arith.mulf %316, %315 : vector<8x64xf32>
    %318 = math.tanh %317 : vector<8x64xf32>
    %cst_133 = arith.constant 1.000000e+00 : f32
    %319 = vector.broadcast %cst_133 : f32 to vector<8x64xf32>
    %320 = arith.addf %319, %318 : vector<8x64xf32>
    %cst_134 = arith.constant 5.000000e-01 : f32
    %321 = vector.broadcast %cst_134 : f32 to vector<8x64xf32>
    %322 = arith.mulf %321, %320 : vector<8x64xf32>
    %323 = arith.mulf %310, %322 : vector<8x64xf32>
    %c1_135 = arith.constant 1 : index
    %c0_136 = arith.constant 0 : index
    %c0_137 = arith.constant 0 : index
    %324 = vector.load %arg11[%c1_135, %c0_136, %c0_137] : memref<2x64x32xf32, #tpu.memory_space<vmem>>, vector<1x64x32xf32>
    %325 = vector.shape_cast %324 : vector<1x64x32xf32> to vector<64x32xf32>
    %cst_138 = arith.constant dense<0.000000e+00> : vector<8x32xf32>
    %326 = tpu.matmul %323, %325, %cst_138 {dimension_numbers = #tpu.dot_dimension_numbers<[1], [0], [0], [1], [0, 0, 1, 1], [], []>} : vector<8x64xf32>, vector<64x32xf32>, vector<8x32xf32> -> vector<8x32xf32>
    %c1_139 = arith.constant 1 : index
    %c0_140 = arith.constant 0 : index
    %c0_141 = arith.constant 0 : index
    %327 = vector.load %arg12[%c1_139, %c0_140, %c0_141] : memref<2x1x32xf32, #tpu.memory_space<vmem>>, vector<1x1x32xf32>
    %328 = vector.shape_cast %327 : vector<1x1x32xf32> to vector<1x32xf32>
    %329 = vector.broadcast %328 : vector<1x32xf32> to vector<8x32xf32>
    %330 = arith.addf %326, %329 : vector<8x32xf32>
    %331 = arith.addf %303, %330 : vector<8x32xf32>
    %c1_142 = arith.constant 1 : index
    %c0_143 = arith.constant 0 : index
    %c0_144 = arith.constant 0 : index
    %332 = vector.load %arg13[%c1_142, %c0_143, %c0_144] : memref<2x1x32xf32, #tpu.memory_space<vmem>>, vector<1x1x32xf32>
    %333 = vector.shape_cast %332 : vector<1x1x32xf32> to vector<1x32xf32>
    %c1_145 = arith.constant 1 : index
    %c0_146 = arith.constant 0 : index
    %c0_147 = arith.constant 0 : index
    %334 = vector.load %arg14[%c1_145, %c0_146, %c0_147] : memref<2x1x32xf32, #tpu.memory_space<vmem>>, vector<1x1x32xf32>
    %335 = vector.shape_cast %334 : vector<1x1x32xf32> to vector<1x32xf32>
    %cst_148 = arith.constant dense<0.000000e+00> : vector<8xf32>
    %336 = vector.multi_reduction <add>, %331, %cst_148 [1] : vector<8x32xf32> to vector<8xf32>
    %337 = vector.shape_cast %336 : vector<8xf32> to vector<8x1xf32>
    %cst_149 = arith.constant 3.200000e+01 : f32
    %338 = vector.broadcast %cst_149 : f32 to vector<8x1xf32>
    %339 = arith.divf %337, %338 : vector<8x1xf32>
    %340 = vector.broadcast %339 : vector<8x1xf32> to vector<8x32xf32>
    %341 = arith.subf %331, %340 : vector<8x32xf32>
    %342 = arith.mulf %341, %341 : vector<8x32xf32>
    %cst_150 = arith.constant dense<0.000000e+00> : vector<8xf32>
    %343 = vector.multi_reduction <add>, %342, %cst_150 [1] : vector<8x32xf32> to vector<8xf32>
    %344 = vector.shape_cast %343 : vector<8xf32> to vector<8x1xf32>
    %cst_151 = arith.constant 3.200000e+01 : f32
    %345 = vector.broadcast %cst_151 : f32 to vector<8x1xf32>
    %346 = arith.divf %344, %345 : vector<8x1xf32>
    %347 = vector.broadcast %339 : vector<8x1xf32> to vector<8x32xf32>
    %348 = arith.subf %331, %347 : vector<8x32xf32>
    %cst_152 = arith.constant 9.99999996E-13 : f32
    %349 = vector.broadcast %cst_152 : f32 to vector<8x1xf32>
    %350 = arith.addf %346, %349 : vector<8x1xf32>
    %351 = math.rsqrt %350 : vector<8x1xf32>
    %352 = vector.broadcast %351 : vector<8x1xf32> to vector<8x32xf32>
    %353 = arith.mulf %348, %352 : vector<8x32xf32>
    %354 = vector.broadcast %333 : vector<1x32xf32> to vector<8x32xf32>
    %355 = arith.mulf %353, %354 : vector<8x32xf32>
    %356 = vector.broadcast %335 : vector<1x32xf32> to vector<8x32xf32>
    %357 = arith.addf %355, %356 : vector<8x32xf32>
    %358 = vector.extract_strided_slice %357 {offsets = [0, 0], sizes = [1, 32], strides = [1, 1]} : vector<8x32xf32> to vector<1x32xf32>
    %359 = vector.extract_strided_slice %357 {offsets = [1, 0], sizes = [1, 32], strides = [1, 1]} : vector<8x32xf32> to vector<1x32xf32>
    %360 = vector.extract_strided_slice %357 {offsets = [2, 0], sizes = [1, 32], strides = [1, 1]} : vector<8x32xf32> to vector<1x32xf32>
    %361 = vector.extract_strided_slice %357 {offsets = [3, 0], sizes = [1, 32], strides = [1, 1]} : vector<8x32xf32> to vector<1x32xf32>
    %362 = vector.extract_strided_slice %357 {offsets = [4, 0], sizes = [1, 32], strides = [1, 1]} : vector<8x32xf32> to vector<1x32xf32>
    %363 = vector.extract_strided_slice %357 {offsets = [5, 0], sizes = [1, 32], strides = [1, 1]} : vector<8x32xf32> to vector<1x32xf32>
    %364 = vector.extract_strided_slice %357 {offsets = [6, 0], sizes = [1, 32], strides = [1, 1]} : vector<8x32xf32> to vector<1x32xf32>
    %365 = vector.extract_strided_slice %357 {offsets = [7, 0], sizes = [1, 32], strides = [1, 1]} : vector<8x32xf32> to vector<1x32xf32>
    %366 = tpu.concatenate %358, %359, %360, %361, %362, %363, %364, %365 in 1 : vector<1x32xf32>, vector<1x32xf32>, vector<1x32xf32>, vector<1x32xf32>, vector<1x32xf32>, vector<1x32xf32>, vector<1x32xf32>, vector<1x32xf32> -> vector<1x256xf32>
    %c0_153 = arith.constant 0 : index
    %c0_154 = arith.constant 0 : index
    %c0_155 = arith.constant 0 : index
    %367 = vector.load %arg17[%c0_153, %c0_154, %c0_155] : memref<1x1x256xf32, #tpu.memory_space<vmem>>, vector<1x1x256xf32>
    %368 = vector.shape_cast %367 : vector<1x1x256xf32> to vector<1x256xf32>
    %369 = vector.shape_cast %366 : vector<1x256xf32> to vector<1x1x256xf32>
    tpu.vector_store %arg17[%c0_153, %c0_154, %c0_155], %369 {strides = array<i32>} : memref<1x1x256xf32, #tpu.memory_space<vmem>>, vector<1x1x256xf32>,
    %370 = vector.extract_strided_slice %357 {offsets = [0, 0], sizes = [1, 32], strides = [1, 1]} : vector<8x32xf32> to vector<1x32xf32>
    %c0_156 = arith.constant 0 : index
    %c0_157 = arith.constant 0 : index
    %371 = vector.load %arg15[%c0_156, %c0_157] : memref<32x32xf32, #tpu.memory_space<vmem>>, vector<32x32xf32>
    %cst_158 = arith.constant dense<0.000000e+00> : vector<1x32xf32>
    %372 = tpu.matmul %370, %371, %cst_158 {dimension_numbers = #tpu.dot_dimension_numbers<[1], [0], [0], [1], [0, 0, 1, 1], [], []>} : vector<1x32xf32>, vector<32x32xf32>, vector<1x32xf32> -> vector<1x32xf32>
    %c0_159 = arith.constant 0 : index
    %c0_160 = arith.constant 0 : index
    %373 = vector.load %arg16[%c0_159, %c0_160] : memref<1x32xf32, #tpu.memory_space<vmem>>, vector<1x32xf32>
    %374 = arith.addf %372, %373 : vector<1x32xf32>
    %375 = math.tanh %374 : vector<1x32xf32>
    %cst_161 = arith.constant dense<0.000000e+00> : vector<1x32xf32>
    %376 = tpu.matmul %3, %357, %cst_161 {dimension_numbers = #tpu.dot_dimension_numbers<[1], [0], [0], [1], [0, 0, 1, 1], [], []>} : vector<1x8xf32>, vector<8x32xf32>, vector<1x32xf32> -> vector<1x32xf32>
    %cst_162 = arith.constant dense<0.000000e+00> : vector<1xf32>
    %377 = vector.multi_reduction <add>, %3, %cst_162 [1] : vector<1x8xf32> to vector<1xf32>
    %378 = vector.shape_cast %377 : vector<1xf32> to vector<1x1xf32>
    %cst_163 = arith.constant 9.99999971E-10 : f32
    %379 = vector.broadcast %cst_163 : f32 to vector<1x1xf32>
    %380 = arith.maximumf %378, %379 : vector<1x1xf32>
    %381 = tpu.reciprocal %380 {approx = true} : vector<1x1xf32> -> vector<1x1xf32>
    %382 = vector.broadcast %381 : vector<1x1xf32> to vector<1x32xf32>
    %383 = arith.mulf %376, %382 : vector<1x32xf32>
    %cst_164 = arith.constant 0.000000e+00 : f32
    %384 = vector.broadcast %cst_164 : f32 to vector<1x64xf32>
    %385 = tpu.concatenate %375, %383, %384 in 1 : vector<1x32xf32>, vector<1x32xf32>, vector<1x64xf32> -> vector<1x128xf32>
    %c0_165 = arith.constant 0 : index
    %c0_166 = arith.constant 0 : index
    %c0_167 = arith.constant 0 : index
    %386 = vector.load %arg18[%c0_165, %c0_166, %c0_167] : memref<1x1x128xf32, #tpu.memory_space<vmem>>, vector<1x1x128xf32>
    %387 = vector.shape_cast %386 : vector<1x1x128xf32> to vector<1x128xf32>
    %388 = vector.shape_cast %385 : vector<1x128xf32> to vector<1x1x128xf32>
    tpu.vector_store %arg18[%c0_165, %c0_166, %c0_167], %388 {strides = array<i32>} : memref<1x1x128xf32, #tpu.memory_space<vmem>>, vector<1x1x128xf32>,
    return
  }
  func.func @transform_0(%arg0: i32) -> (i32, i32, i32) {
    %c0_i32 = arith.constant 0 : i32
    %c0_i32_0 = arith.constant 0 : i32
    %c0_i32_1 = arith.constant 0 : i32
    return %arg0, %c0_i32, %c0_i32_0 : i32, i32, i32
  }
  func.func @transform_1(%arg0: i32) -> (i32, i32, i32) {
    %c0_i32 = arith.constant 0 : i32
    %c0_i32_0 = arith.constant 0 : i32
    %c0_i32_1 = arith.constant 0 : i32
    return %arg0, %c0_i32, %c0_i32_0 : i32, i32, i32
  }
  func.func @transform_2(%arg0: i32) -> (i32, i32, i32) {
    %c0_i32 = arith.constant 0 : i32
    %c0_i32_0 = arith.constant 0 : i32
    %c0_i32_1 = arith.constant 0 : i32
    %c0_i32_2 = arith.constant 0 : i32
    return %c0_i32, %c0_i32_0, %c0_i32_1 : i32, i32, i32
  }
  func.func @transform_3(%arg0: i32) -> (i32, i32, i32) {
    %c0_i32 = arith.constant 0 : i32
    %c0_i32_0 = arith.constant 0 : i32
    %c0_i32_1 = arith.constant 0 : i32
    %c0_i32_2 = arith.constant 0 : i32
    return %c0_i32, %c0_i32_0, %c0_i32_1 : i32, i32, i32
  }
  func.func @transform_4(%arg0: i32) -> (i32, i32, i32) {
    %c0_i32 = arith.constant 0 : i32
    %c0_i32_0 = arith.constant 0 : i32
    %c0_i32_1 = arith.constant 0 : i32
    %c0_i32_2 = arith.constant 0 : i32
    return %c0_i32, %c0_i32_0, %c0_i32_1 : i32, i32, i32
  }
  func.func @transform_5(%arg0: i32) -> (i32, i32, i32) {
    %c0_i32 = arith.constant 0 : i32
    %c0_i32_0 = arith.constant 0 : i32
    %c0_i32_1 = arith.constant 0 : i32
    %c0_i32_2 = arith.constant 0 : i32
    return %c0_i32, %c0_i32_0, %c0_i32_1 : i32, i32, i32
  }
  func.func @transform_6(%arg0: i32) -> (i32, i32, i32) {
    %c0_i32 = arith.constant 0 : i32
    %c0_i32_0 = arith.constant 0 : i32
    %c0_i32_1 = arith.constant 0 : i32
    %c0_i32_2 = arith.constant 0 : i32
    return %c0_i32, %c0_i32_0, %c0_i32_1 : i32, i32, i32
  }
  func.func @transform_7(%arg0: i32) -> (i32, i32, i32) {
    %c0_i32 = arith.constant 0 : i32
    %c0_i32_0 = arith.constant 0 : i32
    %c0_i32_1 = arith.constant 0 : i32
    %c0_i32_2 = arith.constant 0 : i32
    return %c0_i32, %c0_i32_0, %c0_i32_1 : i32, i32, i32
  }
  func.func @transform_8(%arg0: i32) -> (i32, i32, i32) {
    %c0_i32 = arith.constant 0 : i32
    %c0_i32_0 = arith.constant 0 : i32
    %c0_i32_1 = arith.constant 0 : i32
    %c0_i32_2 = arith.constant 0 : i32
    return %c0_i32, %c0_i32_0, %c0_i32_1 : i32, i32, i32
  }
  func.func @transform_9(%arg0: i32) -> (i32, i32, i32) {
    %c0_i32 = arith.constant 0 : i32
    %c0_i32_0 = arith.constant 0 : i32
    %c0_i32_1 = arith.constant 0 : i32
    %c0_i32_2 = arith.constant 0 : i32
    return %c0_i32, %c0_i32_0, %c0_i32_1 : i32, i32, i32
  }
  func.func @transform_10(%arg0: i32) -> (i32, i32, i32) {
    %c0_i32 = arith.constant 0 : i32
    %c0_i32_0 = arith.constant 0 : i32
    %c0_i32_1 = arith.constant 0 : i32
    %c0_i32_2 = arith.constant 0 : i32
    return %c0_i32, %c0_i32_0, %c0_i32_1 : i32, i32, i32
  }
  func.func @transform_11(%arg0: i32) -> (i32, i32, i32) {
    %c0_i32 = arith.constant 0 : i32
    %c0_i32_0 = arith.constant 0 : i32
    %c0_i32_1 = arith.constant 0 : i32
    %c0_i32_2 = arith.constant 0 : i32
    return %c0_i32, %c0_i32_0, %c0_i32_1 : i32, i32, i32
  }
  func.func @transform_12(%arg0: i32) -> (i32, i32, i32) {
    %c0_i32 = arith.constant 0 : i32
    %c0_i32_0 = arith.constant 0 : i32
    %c0_i32_1 = arith.constant 0 : i32
    %c0_i32_2 = arith.constant 0 : i32
    return %c0_i32, %c0_i32_0, %c0_i32_1 : i32, i32, i32
  }
  func.func @transform_13(%arg0: i32) -> (i32, i32, i32) {
    %c0_i32 = arith.constant 0 : i32
    %c0_i32_0 = arith.constant 0 : i32
    %c0_i32_1 = arith.constant 0 : i32
    %c0_i32_2 = arith.constant 0 : i32
    return %c0_i32, %c0_i32_0, %c0_i32_1 : i32, i32, i32
  }
  func.func @transform_14(%arg0: i32) -> (i32, i32) {
    %c0_i32 = arith.constant 0 : i32
    %c0_i32_0 = arith.constant 0 : i32
    %c0_i32_1 = arith.constant 0 : i32
    return %c0_i32, %c0_i32_0 : i32, i32
  }
  func.func @transform_15(%arg0: i32) -> (i32, i32) {
    %c0_i32 = arith.constant 0 : i32
    %c0_i32_0 = arith.constant 0 : i32
    %c0_i32_1 = arith.constant 0 : i32
    return %c0_i32, %c0_i32_0 : i32, i32
  }
  func.func @transform_16(%arg0: i32) -> (i32, i32, i32) {
    %c0_i32 = arith.constant 0 : i32
    %c0_i32_0 = arith.constant 0 : i32
    %c0_i32_1 = arith.constant 0 : i32
    return %arg0, %c0_i32, %c0_i32_0 : i32, i32, i32
  }
  func.func @transform_17(%arg0: i32) -> (i32, i32, i32) {
    %c0_i32 = arith.constant 0 : i32
    %c0_i32_0 = arith.constant 0 : i32
    %c0_i32_1 = arith.constant 0 : i32
    return %arg0, %c0_i32, %c0_i32_0 : i32, i32, i32
  }
}

</mosaic_0001>

<bundles_post_ra>
// kernel: tpu_custom_call.1
= control target key start
LH: loop header
LB: loop body
LE: loop exit
PB: predicated region body
PF: predicated region fallthrough
CT: control target
= control target key end

     0   :  { %s3193_s0 = inlined_call_operand.hbm [shape: f32[2,8,32], index: 0, kind: input, shape index: {}]   ;;  %s3194_s1 = inlined_call_operand.hbm [shape: f32[2,1,8], index: 1, kind: input, shape index: {}]   ;;  %s3195_s2 = inlined_call_operand.vmem [shape: f32[2,32,96], index: 2, kind: input, shape index: {}]   ;;  %s3196_s3 = inlined_call_operand.vmem [shape: f32[2,1,96], index: 3, kind: input, shape index: {}]   ;;  %s3197_s4 = inlined_call_operand.vmem [shape: f32[2,32,32], index: 4, kind: input, shape index: {}]   ;;  %s3198_s5 = inlined_call_operand.hbm [shape: f32[2,1,32], index: 5, kind: input, shape index: {}]   ;;  %s3199_s6 = inlined_call_operand.vmem [shape: f32[2,1,32], index: 6, kind: input, shape index: {}]   ;;  %s3200_s7 = inlined_call_operand.hbm [shape: f32[2,1,32], index: 7, kind: input, shape index: {}]   ;;  %s3201_s8 = inlined_call_operand.vmem [shape: f32[2,32,64], index: 8, kind: input, shape index: {}]   ;;  %s3202_s9 = inlined_call_operand.vmem [shape: f32[2,1,64], index: 9, kind: input, shape index: {}]   ;;  %s3203_s10 = inlined_call_operand.vmem [shape: f32[2,64,32], index: 10, kind: input, shape index: {}]   ;;  %s3204_s11 = inlined_call_operand.vmem [shape: f32[2,1,32], index: 11, kind: input, shape index: {}]   ;;  %s3205_s12 = inlined_call_operand.vmem [shape: f32[2,1,32], index: 12, kind: input, shape index: {}]   ;;  %s3206_s13 = inlined_call_operand.hbm [shape: f32[2,1,32], index: 13, kind: input, shape index: {}]   ;;  %s3207_s14 = inlined_call_operand.hbm [shape: f32[32,32], index: 14, kind: input, shape index: {}]   ;;  %s3208_s15 = inlined_call_operand.vmem [shape: f32[1,32], index: 15, kind: input, shape index: {}]   ;;  %s3209_s16 = inlined_call_operand.hbm [shape: f32[2,1,256], index: 16, kind: output, shape index: {0}]   ;;  %s3210_s17 = inlined_call_operand.hbm [shape: f32[2,1,128], index: 17, kind: output, shape index: {1}]  }
   0x1   :  { %3230 = sst [smem:[#allocation29_spill]] %s3193_s0 }
   0x2   :  { %3231 = sst [smem:[#allocation30_spill]] %s3194_s1 }
   0x3   :  { %3232 = sst [smem:[#allocation31_spill]] %s3198_s5 }
   0x4   :  { %3233 = sst [smem:[#allocation32_spill]] %s3200_s7 }
   0x5   :  { %3234 = sst [smem:[#allocation33_spill]] %s3204_s11 }
   0x6   :  { %3235 = sst [smem:[#allocation34_spill]] %s3205_s12 }
   0x7   :  { %3236 = sst [smem:[#allocation35_spill]] %s3206_s13 }
   0x8   :  { %3237 = sst [smem:[#allocation36_spill]] %s3207_s14 }
   0x9   :  { %3238 = sst [smem:[#allocation37_spill]] %s3208_s15 }
   0xa   :  { %3239 = sst [smem:[#allocation38_spill]] %s3209_s16 }
   0xb   :  { %3240 = sst [smem:[#allocation39_spill]] %s3210_s17 }
   0xc   :  { %23 = vsyncpa [#allocation3], 0 }
   0xd   :  { %25 = vsyncpa [#allocation3 + $0x1], 0 }
   0xe   :  { %26 = vsyncpa [#allocation6], 0 }
   0xf   :  { %28 = vsyncpa [#allocation6 + $0x1], 0 }
  0x10   :  { %29 = vsyncpa [#allocation9], 0 }
  0x11   :  { %30 = vsyncpa [#allocation12], 0 }
  0x12   :  { %31 = vsyncpa [#allocation4], 0 }
  0x13   :  { %33 = vsyncpa [#allocation4 + $0x1], 0 }
  0x14   :  { %34 = vsyncpa [#allocation15], 0 }
  0x15   :  { %36 = vsyncpa [#allocation15 + $0x1], 0  ;;  %s2648_s24 = smov 0   ;;  %s2650_s25 = smov 0  }
  0x16   :  { %s2652_s26 = smov 0   ;;  %s2654_s27 = smov 0  }
  0x17 LB: > { %3241 = sst [smem:[#allocation23_spill]] %s2520_s24  ;;  %s2672_s30 = sadd.s32 4294967295, %s2532_s27   ;;  %s2532_s27 = sphi %s2654_s27, %s3275_s27   ;;  %s2528_s26 = sphi %s2652_s26, %s3277_s26   ;;  %s2524_s25 = sphi %s2650_s25, %s3279_s25   ;;  %s2520_s24 = sphi %s2648_s24, %s3278_s24  }
  0x18   : > { %3242 = sst [smem:[#allocation24_spill]] %s2528_s26  ;;  %p1977_p0 = scmp.ge.s32.totalorder %s2532_s27, 1 }
  0x19   : > { %s3243_s5 = sld [smem:[#allocation31_spill]]  ;;  %p63_p1 = scmp.eq.s32.totalorder %s2672_s30, 0 }
  0x1a   : > { %p445_p2 = scmp.lt.s32.totalorder %s2532_s27, 3  ;;  %s2534_s19 = smov [#allocation7]  }
  0x1b   : > { %s467_s1 = sshll.u32 %s2534_s19, 4  ;;  %s3245_s7 = sld [smem:[#allocation32_spill]]  ;;  %s468_s1 = int_to_ptr.vmem [resolvable:$true] %s467_s1 }
  0x1c   : > { %p2677_p3 = pnand %p1977_p0, %p445_p2  ;;  %s3247_s13 = sld [smem:[#allocation35_spill]] }
  0x1d   : > { %s2536_s15 = smov 16   ;;  %s2537_s16 = smov 1  }
  0x1e   : > { %p2079_p4 = pneg %p2677_p3  ;;  %s3248_s14 = sld [smem:[#allocation36_spill]] }
  0x1f   : > { %s465_s0 = sshll.u32 %s3243_s5, 4  ;;  %s2535_s5 = smov [#allocation8]   ;;  %s466_s0 = int_to_ptr.hbm [resolvable:$true] %s465_s0 }
  0x20   : > { %p2689_p6 = pnand %p2079_p4, %p63_p1  ;;  %s484_s17 = sshll.u32 %s2535_s5, 4  ;;  %s485_s17 = int_to_ptr.vmem [resolvable:$true] %s484_s17 }
  0x21   : > { %s482_s22 = sshll.u32 %s3245_s7, 4  ;;  %s2538_s29 = smov [#allocation10]   ;;  %s483_s22 = int_to_ptr.hbm [resolvable:$true] %s482_s22 }
  0x22   : > { %s511_s19 = sshll.u32 %s3247_s13, 4  ;;  %s513_s5 = sshll.u32 %s2538_s29, 4  ;;  %s512_s19 = int_to_ptr.hbm [resolvable:$true] %s511_s19  ;;  %s514_s5 = int_to_ptr.vmem [resolvable:$true] %s513_s5 }
  0x23   : > { %2082 = dma.hbm_to_vmem [thread:$0]  (!%p2689_p6), %s466_s0, 32, %s468_s1, [#allocation6], %s2536_s15, %s2536_s15, %s2537_s16  }
  0x24   : > { %2085 = dma.hbm_to_vmem [thread:$0]  (!%p2689_p6), %s483_s22, 32, %s485_s17, [#allocation9], %s2536_s15, %s2536_s15, %s2537_s16  }
  0x25   : > { %s525_s28 = sshll.u32 %s3248_s14, 4  ;;  %s2539_s0 = smov [#allocation11]   ;;  %s526_s28 = int_to_ptr.hbm [resolvable:$true] %s525_s28 }
  0x26   : > { %2088 = dma.hbm_to_vmem [thread:$0]  (!%p2689_p6), %s512_s19, 32, %s514_s5, [#allocation9], %s2536_s15, %s2536_s15, %s2537_s16  }
  0x27   : > { %s527_s17 = sshll.u32 %s2539_s0, 4  ;;  %s2540_s1 = smov 128   ;;  %s528_s17 = int_to_ptr.vmem [resolvable:$true] %s527_s17 }
  0x28   : > { %s2541_s22 = smov 8   ;;  %s1976_s20 = sadd.s32 4294967294, %s2532_s27  }
  0x29   : > { %2091 = dma.hbm_to_vmem [thread:$0]  (!%p2689_p6), %s526_s28, 512, %s528_s17, [#allocation12], %s2540_s1, %s2540_s1, %s2541_s22  }
  0x2a   : > { %s2709_s21 = sadd.s32 1, %s2532_s27   ;;  %s49_s7 = sadd.s32 1, %s2528_s26 }
  0x2b   : > { %3249 = sst [smem:[#allocation25_spill]] %s2709_s21  ;;  %s46_s29 = ssub.s32 %s2532_s27, %s2709_s21 }
  0x2c   : > { %p47_p7 = scmp.eq.s32.totalorder %s46_s29, 0  ;;  %p56_p8 = scmp.ne.s32.totalorder %s2528_s26, %s2524_s25 }
  0x2d   : > { %p57_p9 = scmp.eq.s32.totalorder %s2532_s27, 0  ;;  %p62_p10 = scmp.ne.s32.totalorder %s2524_s25, %s2520_s24 }
  0x2e   : > { %s2720_s15 = scalar_select %p47_p7, %s2528_s26, %s49_s7  }
  0x2f   : > { %p2722_p11 = por %p57_p9, %p56_p8  ;;  %p2728_p12 = por %p63_p1, %p62_p10 }
  0x30   : > { %3250 = sst [smem:[#allocation26_spill]] %s2720_s15  ;;  %p406_p13 = scmp.eq.s32.totalorder %s2672_s30, 1 }
  0x31   : > { %p412_p0 = scmp.eq.s32.totalorder %s1976_s20, 1  ;;  %p2110_p2 = scmp.lt.s32.totalorder %s2532_s27, 2 }
  0x32   : > { %s2735_s19 = sand.u32 1, %s2528_s26   ;;  %p2737_p4 = por %p406_p13, %p56_p8 }
  0x33   : > { %p2741_p6 = por %p412_p0, %p62_p10  ;;  %s1983_s5 = sshll.u32 %s2735_s19, 3 }
  0x34   : > { %s3253_s7 = scalar_select %p2737_p4, 1, 0 }
  0x35   : > { %s3255_s28 = scalar_select %p2741_p6, 1, 0 }
  0x36   : > { %3254 = sst [smem:[#allocation27_spill]] %s3253_s7  ;;  %s1984_s0 = sshll.u32 %s2532_s27, 3 }
  0x37   : > { %3256 = sst [smem:[#allocation28_spill]] %s3255_s28  ;;  %s548_s20 = scalar_lea.vmem [#allocation2], %s1983_s5 }
  0x38   : > { %s3257_s22 = sld [smem:[#allocation29_spill]]  ;;  %s556_s13 = sshll.u32 %s548_s20, 4  ;;  %s557_s13 = int_to_ptr.vmem [resolvable:$true] %s556_s13 }
  0x39   : > { %p2752_p7 = pnand %p2110_p2, %p2722_p11  ;;  %s563_s26 = sand.u32 1, %s2532_s27  }
  0x3a   : > { %s545_s21 = scalar_lea.sflag [#allocation3], %s2735_s19 }
  0x3b   : > { %p2362_p9 = pneg %p2752_p7 }
  0x3e   : > { %s552_s29 = scalar_lea.hbm %s3257_s22, %s1984_s0  ;;  %s2365_s0 = scalar_lea.hbm %s3257_s22, 16 }
  0x3f   : > { %s554_s14 = sshll.u32 %s552_s29, 4  ;;  %s555_s14 = int_to_ptr.hbm [resolvable:$true] %s554_s14 }
  0x40   : > { %s2358_s28 = sshra.s32 %s555_s14, 4  ;;  %s2359_s28 = int_to_ptr.hbm [resolvable:$true] %s2358_s28 }
  0x41   : > { %s2360_s24 = scalar_lea.hbm %s2359_s28, 8  ;;  %p2366_p11 = scmp.lt.s32.totalorder %s2359_s28, %s3257_s22 }
  0x42   : > { %p2361_p8 = scmp.ne.s32.totalorder %s2359_s28, %s2360_s24  ;;  %p2367_p0 = scmp.lt.s32.totalorder %s2365_s0, %s2360_s24 }
  0x44   : > { %p2363_p10 = pnand %p2362_p9, %p2361_p8  ;;  %p2368_p2 = por %p2367_p0, %p2366_p11 }
  0x46   : > { %p2364_p13 = pneg %p2363_p10 }
  0x48   : > { %p2369_p5 = pnand %p2368_p2, %p2364_p13 }
  0x4a   : > { %2372 = shalt.err (!%p2369_p5)
}
  0x4b   : > { %2095 = dma.hbm_to_vmem [thread:$0]  (!%p2752_p7), %s555_s14, 128, %s557_s13, %s545_s21  }
  0x4c   : > { %s3259_s7 = sld [smem:[#allocation30_spill]]  ;;  %s566_s5 = scalar_lea.vmem [#allocation5], %s2735_s19 }
  0x4d   : > { %s573_s16 = sshll.u32 %s566_s5, 4  ;;  %s564_s28 = scalar_lea.sflag [#allocation6], %s563_s26  ;;  %s574_s16 = int_to_ptr.vmem [resolvable:$true] %s573_s16 }
  0x52   : > { %s569_s12 = scalar_lea.hbm %s3259_s7, %s2532_s27  ;;  %s2395_s14 = scalar_lea.hbm %s3259_s7, 2 }
  0x53   : > { %s571_s11 = sshll.u32 %s569_s12, 4  ;;  %s572_s11 = int_to_ptr.hbm [resolvable:$true] %s571_s11 }
  0x54   : > { %s2388_s24 = sshra.s32 %s572_s11, 4  ;;  %s2389_s24 = int_to_ptr.hbm [resolvable:$true] %s2388_s24 }
  0x55   : > { %s2390_s0 = scalar_lea.hbm %s2389_s24, 1  ;;  %p2396_p13 = scmp.lt.s32.totalorder %s2389_s24, %s3259_s7 }
  0x56   : > { %p2391_p5 = scmp.ne.s32.totalorder %s2389_s24, %s2390_s0  ;;  %p2397_p11 = scmp.lt.s32.totalorder %s2395_s14, %s2390_s0 }
  0x58   : > { %p2393_p8 = pnand %p2391_p5, %p2362_p9  ;;  %p2398_p0 = por %p2397_p11, %p2396_p13 }
  0x5a   : > { %p2394_p10 = pneg %p2393_p8 }
  0x5c   : > { %p2399_p2 = pnand %p2398_p0, %p2394_p10 }
  0x5e   : > { %2402 = shalt.err (!%p2399_p2)
}
  0x5f   : > { %2098 = dma.hbm_to_vmem [thread:$0]  (!%p2752_p7), %s572_s11, 16, %s574_s16, %s564_s28  }
  0x60   : > { %582 = sbr.rel (%p2677_p3) target bundleno = 4809 (0x12c9), region = 84  ;;  %s2790_s12 = sand.u32 (!%p2677_p3), 1, %s2524_s25  }
  0x61   : > { %s1986_s26 = sshll.u32 (!%p2677_p3), %s2790_s12, 3  ;;  %s585_s19 = scalar_lea.sflag (!%p2677_p3), [#allocation3], %s2790_s12 }
  0x62   : > { %s588_s29 = scalar_lea.vmem (!%p2677_p3), [#allocation2], %s1986_s26 }
  0x65   : > { %2491 = dma.done.wait (%p2728_p12), %s585_s19, 128  }
  0x66   : > { %2493 = vsyncadd (%p2728_p12), %s585_s19, 4294967168  ;;  %s594_s11 = sand.u32 1, %s2672_s30   ;;  %s597_s15 = scalar_lea.vmem [#allocation5], %s2790_s12 }
  0x67   : > { %s595_s18 = scalar_lea.sflag [#allocation6], %s594_s11 }
  0x68   : > { %2495 = dma.done.wait (%p2728_p12), %s595_s18, 16  }
  0x69   : > { %2497 = vsyncadd (%p2728_p12), %s595_s18, 4294967280 }
  0x6a   : > { %2499 = dma.done.wait (%p63_p1), [#allocation6], 32  }
  0x6b   : > { %2501 = vsyncadd (%p63_p1), [#allocation6], 4294967264 }
  0x6c   : > { %2503 = dma.done.wait (%p63_p1), [#allocation9], 64  }
  0x6d   : > { %2505 = vsyncadd (%p63_p1), [#allocation9], 4294967232 }
  0x6e   : > { %2507 = dma.done.wait (%p63_p1), [#allocation12], 512  }
  0x6f   : > { %2509 = vsyncadd (%p63_p1), [#allocation12], 4294966784  ;;  %v684_v0 = vld [vmem:[%s3195_s2 + $0x18] sm:$0xff]  ;;  %v683_v1 = vld [vmem:[%s3195_s2 + $0x10] sm:$0xff]  ;;  %vm689_vm0 = vcmask 261120   ;;  %s2542_s21 = smov 120  }
  0x70   : > { %705 = vmatpush.msra.mxu0 %v684_v0  ;;  %v682_v2 = vld [vmem:[%s3195_s2 + $0x8] sm:$0xff]  ;;  %v681_v3 = vld [vmem:[%s3195_s2] sm:$0xff]  ;;  %s2543_s1 = smov 88   ;;  %s2544_s26 = smov 96   ;;  %vm716_vm1 = vcmask 64512   ;;  %vm997_vm2 = vcmask 130048  }
  0x71   : > { %v2828_v4 = vld [vmem:[%s588_s29] sm:$0xff]  ;;  %s2545_s19 = smov 64   ;;  %s2546_s29 = smov 80   ;;  %vm999_vm3 = vcmask 195584   ;;  %vm1124_vm8 = vcmask 523264   ;;  %vm1774_vm15 = vcmask 57344  }
  0x72   : > { %706 = vmatpush.msra.mxu0 %v683_v1  ;;  %v2172_v5 = vld [vmem:[%s3196_s3] ss:$0 sm:$0xff]  ;;  %s2547_s11 = smov 72   ;;  %s2548_s18 = smov 112  }
  0x73   : > { %v2861_v15 = vld [vmem:[%s597_s15] sm:$0x1]  ;;  %s3229_s15 = smov 56   ;;  %s2550_s23 = smov 104  }
  0x74   : > { %707 = vmatpush.msra.mxu0 %v682_v2  ;;  %v679_v16 = vsub.f32 1.0, %v2861_v15  ;;  %s3224_s20 = smov 40   ;;  %s3225_s5 = smov 48  }
  0x75   : > { %s3227_s16 = smov 8   ;;  %s3226_s28 = smov 24  }
  0x76   : > { %708 = vmatpush.msra.mxu0 %v681_v3  ;;  %v680_v17 = vmul.f32 -1e+09, %v679_v16  ;;  %s3228_s24 = smov 16   ;;  %v1001_v16 = vld [vmem:[%s3197_s4] sm:$0xff]  ;;  %s3261_s0 = sld [smem:[#allocation34_spill]] }
  0x77   : > { %1992 = vmatmul.msk.f32.vlgmr.msra.gmra.mxu0 %vm689_vm0, %v2828_v4  ;;  %s1991_s14 = sshll.u32 %s2790_s12, 1  ;;  %s1789_s13 = scalar_lea.sflag [#allocation4], %s2790_s12 }
  0x78   : > { %v2864_v18 = vperm.slane %v680_v17, 0 }
  0xf4   : > { %v710_v6 = vpop.f32.mrf.mxu0 }
  0xf5   : > { %v2835_v7 = vadd.f32 %v2172_v5, %v710_v6 }
  0xf7   : > { %783 = vrot.lane.b32.xlu2 %v2835_v7, %s2542_s21  ;;  %785 = vrot.lane.b32.xlu1 %v2835_v7, %s2543_s1 }
  0xf8   : > { %714 = vrot.lane.b32.xlu0 %v2835_v7, %s2544_s26 }
  0xff   : > { %757 = vrot.lane.b32.xlu2 %v2835_v7, %s2545_s19 }
 0x107   : > { %852 = vrot.lane.b32.xlu2 %v2835_v7, %s2546_s29 }
 0x10f   : > { %919 = vrot.lane.b32.xlu2 %v2835_v7, %s2547_s11 }
 0x117   : > { %850 = vrot.lane.b32.xlu2 %v2835_v7, %s2548_s18 }
 0x151   : > { %v784_v8 = vpop.permute.xlu2 %783 }
 0x159   : > { %v758_v9 = vpop.permute.xlu2 %757 }
 0x15a   : > { %778 = vmatpush.msrb.mxu0 %v758_v9 }
 0x161   : > { %v853_v10 = vpop.permute.xlu2 %852 }
 0x169   : > { %v920_v11 = vpop.permute.xlu2 %919  ;;  %v786_v12 = vpop.permute.xlu1 %785 }
 0x16a   : > { %v715_v13 = vpop.permute.xlu0 %714  ;;  %1996 = vmatpush.xpose.msk.msra.mxu3 %vm716_vm1, %v786_v12  ;;  %2002 = vmatpush.xpose.msk.msra.mxu0 %vm716_vm1, %v920_v11  ;;  %v1004_v12 = vld [vmem:[%s3197_s4 + $0x18] sm:$0xff] }
 0x16b   : > { %1993 = vmatpush.xpose.msk.msra.mxu1 %vm716_vm1, %v715_v13  ;;  %v1003_v13 = vld [vmem:[%s3197_s4 + $0x10] sm:$0xff] }
 0x16d   : > { %1997 = vmatmul.msk.f32.vlgmr.msra.gmra.mxu3 %vm716_vm1, %v784_v8 }
 0x16e   : > { %1994 = vmatmul.msk.f32.vlgmr.msra.gmra.mxu1 %vm716_vm1, %v2835_v7 }
 0x16f   : > { %1999 = vmatpush.xpose.msk.msrb.mxu1 %vm716_vm1, %v853_v10 }
 0x171   : > { %v851_v14 = vpop.permute.xlu2 %850 }
 0x173   : > { %1024 = vmatpush.msra.mxu1 %v1004_v12 }
 0x175   : > { %1025 = vmatpush.msra.mxu1 %v1003_v13 }
 0x176   : > { %2000 = vmatmul.msk.f32.vlgmr.msrb.gmra.mxu1 %vm716_vm1, %v851_v14  ;;  %v1002_v14 = vld [vmem:[%s3197_s4 + $0x8] sm:$0xff] }
 0x177   : > { %1026 = vmatpush.msra.mxu1 %v1002_v14 }
 0x179   : > { %1027 = vmatpush.msra.mxu1 %v1001_v16 }
 0x1eb   : > { %v738_v19 = vpop.f32.mrf.mxu1 }
 0x1ec   : > { %v741_v20 = vmul.f32 0.35355338, %v738_v19 }
 0x1ee   : > { %v745_v21 = vadd.f32 %v2864_v18, %v741_v20 }
 0x1f0   : > { %v808_v22 = vpop.f32.mrf.mxu3  ;;  %v746_v23 = vsel %vm716_vm1, %v745_v21, -inf }
 0x1f1   : > { %v811_v24 = vmul.f32 0.35355338, %v808_v22  ;;  %747 = vmax.xlane.f32.xlu0 %v746_v23 }
 0x1f3   : > { %v812_v25 = vadd.f32 %v811_v24, %v2864_v18  ;;  %v875_v34 = vpop.f32.mrf.mxu1  ;;  %v2173_v24 = vld [vmem:[#allocation7] ss:$0 sm:$0xff] }
 0x1f4   : > { %v878_v35 = vmul.f32 0.35355338, %v875_v34 }
 0x1f5   : > { %v813_v26 = vsel %vm716_vm1, %v812_v25, -inf }
 0x1f6   : > { %814 = vmax.xlane.f32.xlu2 %v813_v26  ;;  %v879_v36 = vadd.f32 %v878_v35, %v2864_v18 }
 0x1f8   : > { %v880_v37 = vsel %vm716_vm1, %v879_v36, -inf }
 0x20e   : > { %824 = vrot.lane.b32.xlu2 %v2835_v7, %s3229_s15 }
 0x264   : > { %v748_v27 = vpop.xlane.xlu0 %747 }
 0x265   : > { %v749_v28 = vsub.f32 %v745_v21, %v748_v27 }
 0x267   : > { %v750_v29 = vmul.f32 1.442695, %v749_v28 }
 0x269   : > { %2188 = vpow2.f32 %v750_v29  ;;  %v815_v30 = vpop.xlane.xlu2 %814  ;;  %v2556_v29 = vmov 32.0  }
 0x26a   : > { %v816_v45 = vsub.f32 %v812_v25, %v815_v30 }
 0x26c   : > { %v817_v46 = vmul.f32 1.442695, %v816_v45 }
 0x26f   : > { %v2189_v31 = vpop.eup %2188 }
 0x270   : > { %v752_v32 = vsel %vm716_vm1, %v2189_v31, 0.0 }
 0x271   : > { %753 = vadd.xlane.f32.xlu1 %v752_v32  ;;  %v825_v33 = vpop.permute.xlu2 %824 }
 0x272   : > { %845 = vmatpush.msra.mxu2 %v825_v33 }
 0x28a   : > { %917 = vrot.lane.b32.xlu1 %v2835_v7, %s2550_s23 }
 0x2b4   : > { %881 = vmax.xlane.f32.xlu1 %v880_v37 }
 0x2cd   : > { %958 = vrot.lane.b32.xlu1 %v2835_v7, %s3224_s20 }
 0x2e4   : > { %v754_v38 = vpop.xlane.xlu1 %753 }
 0x2e5   : > { %2190 = vrcp.f32 %v754_v38 }
 0x2e6   : > { %2192 = vpow2.f32 %v817_v46 }
 0x2eb   : > { %v2191_v39 = vpop.eup %2190 }
 0x2ec   : > { %v756_v40 = vmul.f32 %v2191_v39, %v2189_v31  ;;  %v2193_v53 = vpop.eup %2192 }
 0x2ed   : > { %v819_v54 = vsel %vm716_vm1, %v2193_v53, 0.0 }
 0x2ee   : > { %1995 = vmatmul.msk.f32.vlgmr.msrb.gmra.mxu0 %vm716_vm1, %v756_v40  ;;  %v1075_v40 = vld [vmem:[%s3201_s8 + $0x18] sm:$0xff] }
 0x2fc   : > { %v918_v41 = vpop.permute.xlu1 %917 }
 0x2fd   : > { %2003 = vmatmul.msk.f32.vlgmr.msra.gmra.mxu0 %vm716_vm1, %v918_v41  ;;  %v1074_v41 = vld [vmem:[%s3201_s8 + $0x10] sm:$0xff] }
 0x327   : > { %v882_v42 = vpop.xlane.xlu1 %881 }
 0x328   : > { %v883_v50 = vsub.f32 %v879_v36, %v882_v42  ;;  %v1073_v42 = vld [vmem:[%s3201_s8 + $0x8] sm:$0xff] }
 0x32a   : > { %v884_v52 = vmul.f32 1.442695, %v883_v50 }
 0x32c   : > { %2194 = vpow2.f32 %v884_v52 }
 0x332   : > { %v2195_v55 = vpop.eup %2194 }
 0x333   : > { %v886_v56 = vsel %vm716_vm1, %v2195_v55, 0.0 }
 0x33f   : > { %v959_v43 = vpop.permute.xlu1 %958 }
 0x340   : > { %979 = vmatpush.msrb.mxu2 %v959_v43  ;;  %v1072_v43 = vld [vmem:[%s3201_s8] sm:$0xff] }
 0x36b   : > { %v2881_v44 = vpop.f32.mrf.mxu0 }
 0x37a   : > { %v942_v47 = vpop.f32.mrf.mxu0 }
 0x37b   : > { %v945_v48 = vmul.f32 0.35355338, %v942_v47 }
 0x37d   : > { %v946_v49 = vadd.f32 %v945_v48, %v2864_v18 }
 0x37f   : > { %v947_v51 = vsel %vm716_vm1, %v946_v49, -inf }
 0x380   : > { %948 = vmax.xlane.f32.xlu0 %v947_v51 }
 0x388   : > { %820 = vadd.xlane.f32.xlu0 %v819_v54 }
 0x390   : > { %887 = vadd.xlane.f32.xlu0 %v886_v56  ;;  %v2175_v56 = vld [vmem:[#allocation8] ss:$0 sm:$0xff] }
 0x3f3   : > { %v949_v57 = vpop.xlane.xlu0 %948 }
 0x3f4   : > { %v950_v58 = vsub.f32 %v946_v49, %v949_v57 }
 0x3f6   : > { %v951_v59 = vmul.f32 1.442695, %v950_v58 }
 0x3f8   : > { %2196 = vpow2.f32 %v951_v59  ;;  %v1119_v59 = vld [vmem:[%s3203_s10 + $0x38] sm:$0xff] }
 0x3f9   : > { %1136 = vmatpush.msrb.mxu0 %v1119_v59 }
 0x3fb   : > { %v821_v60 = vpop.xlane.xlu0 %820 }
 0x3fc   : > { %2198 = vrcp.f32 %v821_v60  ;;  %v1118_v60 = vld [vmem:[%s3203_s10 + $0x30] sm:$0xff] }
 0x3fd   : > { %1137 = vmatpush.msrb.mxu0 %v1118_v60 }
 0x3fe   : > { %v2197_v61 = vpop.eup %2196 }
 0x3ff   : > { %v953_v62 = vsel %vm716_vm1, %v2197_v61, 0.0 }
 0x400   : > { %954 = vadd.xlane.f32.xlu0 %v953_v62  ;;  %v1116_v62 = vld [vmem:[%s3203_s10 + $0x20] sm:$0xff] }
 0x402   : > { %v2199_v63 = vpop.eup %2198 }
 0x403   : > { %v823_v0 = vmul.f32 %v2199_v63, %v2193_v53  ;;  %v888_v1 = vpop.xlane.xlu0 %887  ;;  %v2174_v53 = vld [vmem:[%s3199_s6] ss:$0 sm:$0xff]  ;;  %v1115_v63 = vld [vmem:[%s3203_s10 + $0x18] sm:$0xff] }
 0x405   : > { %1998 = vmatmul.msk.f32.vlgmr.msra.gmra.mxu2 %vm716_vm1, %v823_v0  ;;  %v1114_v0 = vld [vmem:[%s3203_s10 + $0x10] sm:$0xff] }
 0x414   : > { %891 = vrot.lane.b32.xlu0 %v2835_v7, %s3225_s5  ;;  %s3268_s5 = sld [smem:[#allocation38_spill]] }
 0x473   : > { %v955_v2 = vpop.xlane.xlu0 %954 }
 0x474   : > { %2200 = vrcp.f32 %v955_v2  ;;  %v1112_v2 = vld [vmem:[%s3203_s10] sm:$0xff] }
 0x475   : > { %2202 = vrcp.f32 %v888_v1  ;;  %v1113_v1 = vld [vmem:[%s3203_s10 + $0x8] sm:$0xff] }
 0x476   : > { %2204 = vrcp.f32 %v2556_v29  ;;  %v2010_v29 = vld [vmem:[%s3195_s2 + $0x30] sm:$0xff] }
 0x47a   : > { %v2201_v3 = vpop.eup %2200 }
 0x47b   : > { %v957_v5 = vmul.f32 %v2201_v3, %v2197_v61  ;;  %v2203_v6 = vpop.eup %2202  ;;  %v1117_v61 = vld [vmem:[%s3203_s10 + $0x28] sm:$0xff]  ;;  %v2176_v3 = vld [vmem:[%s3202_s9] ss:$0 sm:$0xff] }
 0x47c   : > { %v890_v9 = vmul.f32 %v2203_v6, %v2195_v55  ;;  %v2205_v30 = vpop.eup %2204  ;;  %1138 = vmatpush.msrb.mxu0 %v1117_v61 }
 0x47d   : > { %2004 = vmatmul.msk.f32.vlgmr.msrb.gmra.mxu2 %vm716_vm1, %v957_v5  ;;  %v1039_v31 = vmul.f32 32.0, %v2205_v30  ;;  %vm1043_vm4 = vweird.f32 %v2205_v30 }
 0x47e   : > { %1139 = vmatpush.msrb.mxu0 %v1116_v62 }
 0x47f   : > { %v1040_v32 = vsub.f32 1.0, %v1039_v31  ;;  %v2008_v31 = vld [vmem:[%s3195_s2 + $0x20] sm:$0xff] }
 0x480   : > { %1140 = vmatpush.msrb.mxu0 %v1115_v63 }
 0x481   : > { %v1041_v33 = vmul.f32 %v2205_v30, %v1040_v32 }
 0x482   : > { %1141 = vmatpush.msrb.mxu0 %v1114_v0 }
 0x483   : > { %v1042_v34 = vadd.f32 %v2205_v30, %v1041_v33 }
 0x484   : > { %1142 = vmatpush.msrb.mxu0 %v1113_v1 }
 0x485   : > { %v2915_v35 = vsel %vm1043_vm4, %v2205_v30, %v1042_v34  ;;  %v2009_v30 = vld [vmem:[%s3195_s2 + $0x28] sm:$0xff] }
 0x486   : > { %v892_v8 = vpop.permute.xlu0 %891  ;;  %1143 = vmatpush.msrb.mxu0 %v1112_v2 }
 0x487   : > { %912 = vmatpush.msrb.mxu3 %v892_v8 }
 0x488   : > { %v847_v10 = vpop.f32.mrf.mxu2  ;;  %2001 = vmatmul.msk.f32.vlgmr.msrb.gmra.mxu3 %vm716_vm1, %v890_v9 }
 0x489   : > { %985 = vrot.lane.b32.xlu0 %v847_v10, %s3227_s16  ;;  %1095 = vmatpush.msra.mxu3 %v1075_v40  ;;  %s3260_s16 = sld [smem:[#allocation33_spill]] }
 0x48b   : > { %1096 = vmatpush.msra.mxu3 %v1074_v41  ;;  %v2178_v41 = vld [vmem:[%s3261_s0] ss:$0 sm:$0xff] }
 0x48d   : > { %1097 = vmatpush.msra.mxu3 %v1073_v42 }
 0x48f   : > { %1098 = vmatpush.msra.mxu3 %v1072_v43 }
 0x4fb   : > { %v986_v17 = vpop.permute.xlu0 %985 }
 0x4fc   : > { %v996_v20 = vsel %vm716_vm1, %v2881_v44, %v986_v17  ;;  %v2177_v17 = vld [vmem:[%s3260_s16] ss:$0 sm:$0xff] }
 0x500   : > { %v981_v11 = vpop.f32.mrf.mxu2 }
 0x501   : > { %993 = vrot.lane.b32.xlu1 %v981_v11, %s3226_s28 }
 0x50b   : > { %v914_v7 = vpop.f32.mrf.mxu3 }
 0x50c   : > { %989 = vrot.lane.b32.xlu2 %v914_v7, %s3228_s24 }
 0x566   : > { %v990_v19 = vpop.permute.xlu2 %989 }
 0x567   : > { %v998_v21 = vsel %vm997_vm2, %v996_v20, %v990_v19 }
 0x573   : > { %v994_v22 = vpop.permute.xlu1 %993 }
 0x574   : > { %v1000_v23 = vsel %vm999_vm3, %v998_v21, %v994_v22 }
 0x575   : > { %2005 = vmatmul.msk.f32.vlgmr.msra.gmra.mxu1 %vm689_vm0, %v1000_v23 }
 0x5f2   : > { %v1029_v25 = vpop.f32.mrf.mxu1 }
 0x5f3   : > { %v1030_v26 = vadd.f32 %v2173_v24, %v1029_v25 }
 0x5f5   : > { %v1032_v27 = vadd.f32 %v1030_v26, %v2828_v4 }
 0x5f7   : > { %v1035_v28 = vsel %vm689_vm0, %v1032_v27, 0.0 }
 0x5f8   : > { %1036 = vadd.xlane.f32.xlu0 %v1035_v28  ;;  %v2011_v28 = vld [vmem:[%s3195_s2 + $0x38] sm:$0xff] }
 0x5f9   : > { %1206 = vmatpush.msra.mxu2 %v2011_v28 }
 0x5fb   : > { %1207 = vmatpush.msra.mxu2 %v2010_v29 }
 0x5fd   : > { %1208 = vmatpush.msra.mxu2 %v2009_v30 }
 0x5ff   : > { %1209 = vmatpush.msra.mxu2 %v2008_v31 }
 0x66b   : > { %v1037_v36 = vpop.xlane.xlu0 %1036 }
 0x66c   : > { %v1045_v37 = vmul.f32 %v2915_v35, %v1037_v36 }
 0x66e   : > { %v1046_v38 = vsub.f32 %v1032_v27, %v1045_v37 }
 0x670   : > { %v1047_v39 = vmul.f32 %v1046_v38, %v1046_v38 }
 0x672   : > { %v1048_v4 = vsel %vm689_vm0, %v1047_v39, 0.0 }
 0x673   : > { %1049 = vadd.xlane.f32.xlu2 %v1048_v4 }
 0x6e6   : > { %v1050_v44 = vpop.xlane.xlu2 %1049 }
 0x6e7   : > { %v1051_v45 = vmul.f32 %v1050_v44, %v2915_v35  ;;  %v2179_v44 = vld [vmem:[#allocation10] ss:$0 sm:$0xff] }
 0x6e9   : > { %v1052_v46 = vadd.f32 1e-12, %v1051_v45 }
 0x6eb   : > { %2206 = vrsqrt.f32 %v1052_v46  ;;  %vm1059_vm6 = vweird.f32 %v1052_v46 }
 0x6f1   : > { %v2207_v47 = vpop.eup %2206 }
 0x6f2   : > { %v1054_v48 = vmul.f32 %v2207_v47, %v1052_v46  ;;  %vm1060_vm5 = vweird.f32 %v2207_v47 }
 0x6f3   : > { %vm1061_vm7 = vmor %vm1059_vm6, %vm1060_vm5  ;;  %vm1715_vm5 = vcmask 1040384  }
 0x6f4   : > { %v1055_v49 = vmul.f32 %v2207_v47, %v1054_v48 }
 0x6f6   : > { %v1056_v50 = vmul.f32 0.5, %v1055_v49 }
 0x6f8   : > { %v1057_v51 = vsub.f32 1.5, %v1056_v50 }
 0x6fa   : > { %v1058_v52 = vmul.f32 %v2207_v47, %v1057_v51 }
 0x6fc   : > { %v1062_v54 = vsel %vm1061_vm7, %v2207_v47, %v1058_v52  ;;  %v2180_v47 = vld [vmem:[%s3196_s3 + $0x1] ss:$0 sm:$0xff] }
 0x6fd   : > { %v1063_v55 = vmul.f32 %v1062_v54, %v1046_v38 }
 0x6ff   : > { %v1067_v57 = vmul.f32 %v2174_v53, %v1063_v55 }
 0x701   : > { %v1071_v58 = vadd.f32 %v2175_v56, %v1067_v57 }
 0x703   : > { %2006 = vmatmul.msk.f32.vlgmr.msra.gmra.mxu3 %vm689_vm0, %v1071_v58 }
 0x786   : > { %v1100_v5 = vpop.f32.mrf.mxu3 }
 0x787   : > { %v1101_v6 = vadd.f32 %v2176_v3, %v1100_v5 }
 0x789   : > { %v1103_v8 = vmul.f32 %v1101_v6, %v1101_v6 }
 0x78b   : > { %v1104_v9 = vmul.f32 %v1103_v8, %v1101_v6 }
 0x78d   : > { %v1105_v10 = vmul.f32 0.044715, %v1104_v9 }
 0x78f   : > { %v1106_v11 = vadd.f32 %v1105_v10, %v1101_v6 }
 0x791   : > { %v1107_v7 = vmul.f32 0.7978846, %v1106_v11 }
 0x793   : > { %2208 = vtanh.f32 %v1107_v7 }
 0x799   : > { %v2209_v12 = vpop.eup %2208 }
 0x79a   : > { %v1109_v13 = vadd.f32 1.0, %v2209_v12 }
 0x79c   : > { %v1110_v14 = vmul.f32 0.5, %v1109_v13 }
 0x79e   : > { %v1111_v16 = vmul.f32 %v1110_v14, %v1101_v6 }
 0x7a0   : > { %2007 = vmatmul.msk.f32.vlgmr.msrb.gmra.mxu0 %vm1124_vm8, %v1111_v16 }
 0x81d   : > { %v1145_v19 = vpop.f32.mrf.mxu0 }
 0x81e   : > { %v1146_v20 = vadd.f32 %v2177_v17, %v1145_v19 }
 0x820   : > { %v1148_v21 = vadd.f32 %v1146_v20, %v1071_v58 }
 0x822   : > { %v1151_v22 = vsel %vm689_vm0, %v1148_v21, 0.0 }
 0x823   : > { %1152 = vadd.xlane.f32.xlu1 %v1151_v22 }
 0x896   : > { %v1153_v23 = vpop.xlane.xlu1 %1152 }
 0x897   : > { %v1154_v24 = vmul.f32 %v1153_v23, %v2915_v35 }
 0x899   : > { %v1155_v25 = vsub.f32 %v1148_v21, %v1154_v24 }
 0x89b   : > { %v1156_v26 = vmul.f32 %v1155_v25, %v1155_v25 }
 0x89d   : > { %v1157_v27 = vsel %vm689_vm0, %v1156_v26, 0.0 }
 0x89e   : > { %1158 = vadd.xlane.f32.xlu0 %v1157_v27 }
 0x911   : > { %v1159_v32 = vpop.xlane.xlu0 %1158 }
 0x912   : > { %v1160_v33 = vmul.f32 %v1159_v32, %v2915_v35 }
 0x914   : > { %v1161_v34 = vadd.f32 1e-12, %v1160_v33 }
 0x916   : > { %2210 = vrsqrt.f32 %v1161_v34  ;;  %vm1168_vm10 = vweird.f32 %v1161_v34 }
 0x91c   : > { %v2211_v36 = vpop.eup %2210 }
 0x91d   : > { %v1163_v37 = vmul.f32 %v2211_v36, %v1161_v34  ;;  %vm1169_vm9 = vweird.f32 %v2211_v36 }
 0x91e   : > { %vm1170_vm11 = vmor %vm1168_vm10, %vm1169_vm9 }
 0x91f   : > { %v1164_v38 = vmul.f32 %v2211_v36, %v1163_v37 }
 0x921   : > { %v1165_v39 = vmul.f32 0.5, %v1164_v38 }
 0x923   : > { %v1166_v4 = vsub.f32 1.5, %v1165_v39 }
 0x925   : > { %v1167_v40 = vmul.f32 %v2211_v36, %v1166_v4 }
 0x927   : > { %v1171_v42 = vsel %vm1170_vm11, %v2211_v36, %v1167_v40 }
 0x928   : > { %v1172_v43 = vmul.f32 %v1171_v42, %v1155_v25 }
 0x92a   : > { %v1176_v45 = vmul.f32 %v2178_v41, %v1172_v43 }
 0x92c   : > { %v2986_v46 = vadd.f32 %v2179_v44, %v1176_v45 }
 0x92e   : > { %2013 = vmatmul.msk.f32.vlgmr.msra.gmra.mxu2 %vm689_vm0, %v2986_v46 }
 0x9b1   : > { %v1211_v48 = vpop.f32.mrf.mxu2 }
 0x9b2   : > { %v2993_v49 = vadd.f32 %v2180_v47, %v1211_v48 }
 0x9b4   : > { %1254 = vrot.lane.b32.xlu0 %v2993_v49, %s2545_s19  ;;  %1215 = vrot.lane.b32.xlu2 %v2993_v49, %s2544_s26 }
 0x9bc   : > { %1280 = vrot.lane.b32.xlu2 %v2993_v49, %s2542_s21  ;;  %s3262_s21 = smov 56  }
 0x9c4   : > { %1349 = vrot.lane.b32.xlu2 %v2993_v49, %s2546_s29  ;;  %s3264_s29 = smov 40  }
 0x9cc   : > { %1414 = vrot.lane.b32.xlu2 %v2993_v49, %s2550_s23  ;;  %s3267_s23 = smov 16  }
 0xa0e   : > { %v1216_v50 = vpop.permute.xlu2 %1215 }
 0xa0f   : > { %2014 = vmatpush.xpose.msk.msrb.mxu1 %vm716_vm1, %v1216_v50 }
 0xa12   : > { %2015 = vmatmul.msk.f32.vlgmr.msrb.gmra.mxu1 %vm716_vm1, %v2993_v49 }
 0xa16   : > { %v1281_v51 = vpop.permute.xlu2 %1280 }
 0xa1e   : > { %v1350_v53 = vpop.permute.xlu2 %1349 }
 0xa26   : > { %v1255_v52 = vpop.permute.xlu0 %1254  ;;  %v1415_v6 = vpop.permute.xlu2 %1414 }
 0xa27   : > { %1275 = vmatpush.msrb.mxu3 %v1255_v52  ;;  %v2029_v52 = vld [vmem:[%s3197_s4 + $0x38] sm:$0xff] }
 0xa29   : > { %2020 = vmatpush.xpose.msk.msra.mxu3 %vm716_vm1, %v1350_v53  ;;  %v2028_v53 = vld [vmem:[%s3197_s4 + $0x30] sm:$0xff] }
 0xa8f   : > { %v1238_v54 = vpop.f32.mrf.mxu1 }
 0xa90   : > { %v1241_v55 = vmul.f32 0.35355338, %v1238_v54  ;;  %v2027_v54 = vld [vmem:[%s3197_s4 + $0x28] sm:$0xff] }
 0xa92   : > { %v1242_v56 = vadd.f32 %v1241_v55, %v2864_v18  ;;  %v2026_v55 = vld [vmem:[%s3197_s4 + $0x20] sm:$0xff] }
 0xa94   : > { %v1243_v57 = vsel %vm716_vm1, %v1242_v56, -inf }
 0xa95   : > { %1244 = vmax.xlane.f32.xlu1 %v1243_v57 }
 0xaae   : > { %1282 = vrot.lane.b32.xlu1 %v2993_v49, %s2543_s1  ;;  %s3263_s1 = smov 48  }
 0xab6   : > { %1347 = vrot.lane.b32.xlu1 %v2993_v49, %s2548_s18  ;;  %s3266_s18 = smov 24  }
 0xb08   : > { %v1245_v58 = vpop.xlane.xlu1 %1244 }
 0xb09   : > { %v1246_v59 = vsub.f32 %v1242_v56, %v1245_v58 }
 0xb0b   : > { %v1247_v60 = vmul.f32 1.442695, %v1246_v59 }
 0xb0d   : > { %2212 = vpow2.f32 %v1247_v60 }
 0xb13   : > { %v2213_v61 = vpop.eup %2212 }
 0xb14   : > { %v1249_v62 = vsel %vm716_vm1, %v2213_v61, 0.0 }
 0xb15   : > { %1250 = vadd.xlane.f32.xlu0 %v1249_v62  ;;  %v2181_v62 = vld [vmem:[#allocation7 + $0x1] ss:$0 sm:$0xff] }
 0xb20   : > { %v1283_v63 = vpop.permute.xlu1 %1282 }
 0xb21   : > { %2017 = vmatpush.xpose.msk.msrb.mxu2 %vm716_vm1, %v1283_v63 }
 0xb24   : > { %2018 = vmatmul.msk.f32.vlgmr.msrb.gmra.mxu2 %vm716_vm1, %v1281_v51 }
 0xb28   : > { %v1348_v3 = vpop.permute.xlu1 %1347 }
 0xb29   : > { %1416 = vrot.lane.b32.xlu0 %v2993_v49, %s2547_s11  ;;  %s3265_s11 = smov 8  }
 0xb88   : > { %v1251_v0 = vpop.xlane.xlu0 %1250 }
 0xb89   : > { %2214 = vrcp.f32 %v1251_v0 }
 0xb8f   : > { %v2215_v1 = vpop.eup %2214 }
 0xb90   : > { %v1253_v2 = vmul.f32 %v2215_v1, %v2213_v61 }
 0xb92   : > { %2016 = vmatmul.msk.f32.vlgmr.msrb.gmra.mxu3 %vm716_vm1, %v1253_v2 }
 0xb93   : > { %1521 = vmatpush.msrb.mxu3 %v2029_v52 }
 0xb95   : > { %1522 = vmatpush.msrb.mxu3 %v2028_v53 }
 0xb97   : > { %1523 = vmatpush.msrb.mxu3 %v2027_v54 }
 0xb99   : > { %1524 = vmatpush.msrb.mxu3 %v2026_v55 }
 0xb9a   : > { %2021 = vmatmul.msk.f32.vlgmr.msra.gmra.mxu3 %vm716_vm1, %v1348_v3 }
 0xb9b   : > { %v1417_v5 = vpop.permute.xlu0 %1416 }
 0xb9c   : > { %2023 = vmatpush.xpose.msk.msra.mxu2 %vm716_vm1, %v1417_v5 }
 0xb9f   : > { %2024 = vmatmul.msk.f32.vlgmr.msra.gmra.mxu2 %vm716_vm1, %v1415_v6 }
 0xba7   : > { %v1305_v8 = vpop.f32.mrf.mxu2 }
 0xba8   : > { %v1308_v9 = vmul.f32 0.35355338, %v1305_v8 }
 0xbaa   : > { %v1309_v10 = vadd.f32 %v1308_v9, %v2864_v18 }
 0xbac   : > { %v1310_v11 = vsel %vm716_vm1, %v1309_v10, -inf }
 0xbad   : > { %1311 = vmax.xlane.f32.xlu0 %v1310_v11  ;;  %v2033_v11 = vld [vmem:[%s3201_s8 + $0x28] sm:$0xff] }
 0xc15   : > { %v3026_v7 = vpop.f32.mrf.mxu3 }
 0xc1d   : > { %v1372_v12 = vpop.f32.mrf.mxu3 }
 0xc1e   : > { %v1375_v13 = vmul.f32 0.35355338, %v1372_v12 }
 0xc20   : > { %v1312_v14 = vpop.xlane.xlu0 %1311  ;;  %v1376_v16 = vadd.f32 %v1375_v13, %v2864_v18 }
 0xc21   : > { %v1313_v17 = vsub.f32 %v1309_v10, %v1312_v14  ;;  %v2035_v10 = vld [vmem:[%s3201_s8 + $0x38] sm:$0xff] }
 0xc22   : > { %v1439_v19 = vpop.f32.mrf.mxu2  ;;  %v1377_v20 = vsel %vm716_vm1, %v1376_v16, -inf }
 0xc23   : > { %v1314_v21 = vmul.f32 1.442695, %v1313_v17  ;;  %v1442_v22 = vmul.f32 0.35355338, %v1439_v19  ;;  %1378 = vmax.xlane.f32.xlu1 %v1377_v20 }
 0xc25   : > { %2216 = vpow2.f32 %v1314_v21  ;;  %v1443_v23 = vadd.f32 %v1442_v22, %v2864_v18 }
 0xc27   : > { %v1444_v24 = vsel %vm716_vm1, %v1443_v23, -inf }
 0xc28   : > { %1445 = vmax.xlane.f32.xlu2 %v1444_v24 }
 0xc2b   : > { %v2217_v25 = vpop.eup %2216 }
 0xc2c   : > { %v1316_v26 = vsel %vm716_vm1, %v2217_v25, 0.0 }
 0xc2d   : > { %1317 = vadd.xlane.f32.xlu0 %v1316_v26  ;;  %v2183_v26 = vld [vmem:[#allocation8 + $0x1] ss:$0 sm:$0xff] }
 0xc41   : > { %1321 = vrot.lane.b32.xlu0 %v2993_v49, %s3262_s21 }
 0xc96   : > { %v1379_v27 = vpop.xlane.xlu1 %1378 }
 0xc97   : > { %v1380_v28 = vsub.f32 %v1376_v16, %v1379_v27 }
 0xc99   : > { %v1381_v29 = vmul.f32 1.442695, %v1380_v28 }
 0xc9b   : > { %2218 = vpow2.f32 %v1381_v29  ;;  %v1446_v30 = vpop.xlane.xlu2 %1445  ;;  %v2045_v29 = vld [vmem:[%s3203_s10 + $0x78] sm:$0xff] }
 0xc9c   : > { %v1447_v31 = vsub.f32 %v1443_v23, %v1446_v30  ;;  %v2182_v23 = vld [vmem:[%s3199_s6 + $0x1] ss:$0 sm:$0xff]  ;;  %1631 = vmatpush.msrb.mxu2 %v2045_v29  ;;  %v2044_v30 = vld [vmem:[%s3203_s10 + $0x70] sm:$0xff] }
 0xc9e   : > { %v1448_v32 = vmul.f32 1.442695, %v1447_v31  ;;  %1632 = vmatpush.msrb.mxu2 %v2044_v30  ;;  %v2043_v31 = vld [vmem:[%s3203_s10 + $0x68] sm:$0xff] }
 0xca0   : > { %2220 = vpow2.f32 %v1448_v32  ;;  %v1318_v36 = vpop.xlane.xlu0 %1317  ;;  %1633 = vmatpush.msrb.mxu2 %v2043_v31  ;;  %v2042_v32 = vld [vmem:[%s3203_s10 + $0x60] sm:$0xff]  ;;  %v1718_v31 = vlaneseq }
 0xca1   : > { %v2219_v33 = vpop.eup %2218  ;;  %2222 = vrcp.f32 %v1318_v36  ;;  %v2038_v36 = vld [vmem:[%s3203_s10 + $0x40] sm:$0xff] }
 0xca2   : > { %v1383_v18 = vsel %vm716_vm1, %v2219_v33, 0.0  ;;  %1634 = vmatpush.msrb.mxu2 %v2042_v32  ;;  %vm1720_vm6 = vcmp.lt.s32.totalorder %v1718_v31, 256 }
 0xca3   : > { %1384 = vadd.xlane.f32.xlu1 %v1383_v18  ;;  %v2040_v18 = vld [vmem:[%s3203_s10 + $0x50] sm:$0xff] }
 0xca6   : > { %v2221_v34 = vpop.eup %2220 }
 0xca7   : > { %v1450_v37 = vsel %vm716_vm1, %v2221_v34, 0.0  ;;  %v2223_v38 = vpop.eup %2222 }
 0xca8   : > { %1451 = vadd.xlane.f32.xlu2 %v1450_v37  ;;  %v1320_v39 = vmul.f32 %v2223_v38, %v2217_v25  ;;  %v2184_v37 = vld [vmem:[%s3202_s9 + $0x1] ss:$0 sm:$0xff] }
 0xcb3   : > { %v1322_v4 = vpop.permute.xlu0 %1321 }
 0xcb4   : > { %1342 = vmatpush.msra.mxu1 %v1322_v4 }
 0xcb5   : > { %2019 = vmatmul.msk.f32.vlgmr.msra.gmra.mxu1 %vm716_vm1, %v1320_v39 }
 0xcbc   : > { %1388 = vrot.lane.b32.xlu1 %v2993_v49, %s3263_s1 }
 0xcc0   : > { %1455 = vrot.lane.b32.xlu2 %v2993_v49, %s3264_s29 }
 0xd16   : > { %v1385_v42 = vpop.xlane.xlu1 %1384 }
 0xd1b   : > { %v1452_v40 = vpop.xlane.xlu2 %1451 }
 0xd1c   : > { %2224 = vrcp.f32 %v1452_v40 }
 0xd1d   : > { %2226 = vrcp.f32 %v1385_v42 }
 0xd22   : > { %v2225_v41 = vpop.eup %2224 }
 0xd23   : > { %v1454_v43 = vmul.f32 %v2225_v41, %v2221_v34  ;;  %v1456_v44 = vpop.permute.xlu2 %1455  ;;  %v2227_v45 = vpop.eup %2226  ;;  %v2039_v34 = vld [vmem:[%s3203_s10 + $0x48] sm:$0xff] }
 0xd24   : > { %1476 = vmatpush.msrb.mxu1 %v1456_v44  ;;  %v1387_v47 = vmul.f32 %v2227_v45, %v2219_v33  ;;  %v2041_v33 = vld [vmem:[%s3203_s10 + $0x58] sm:$0xff] }
 0xd25   : > { %2025 = vmatmul.msk.f32.vlgmr.msrb.gmra.mxu1 %vm716_vm1, %v1454_v43  ;;  %1635 = vmatpush.msrb.mxu2 %v2041_v33 }
 0xd27   : > { %1636 = vmatpush.msrb.mxu2 %v2040_v18 }
 0xd29   : > { %1637 = vmatpush.msrb.mxu2 %v2039_v34 }
 0xd2b   : > { %1638 = vmatpush.msrb.mxu2 %v2038_v36 }
 0xd2e   : > { %v1389_v48 = vpop.permute.xlu1 %1388 }
 0xd2f   : > { %1409 = vmatpush.msra.mxu0 %v1389_v48 }
 0xd30   : > { %2022 = vmatmul.msk.f32.vlgmr.msra.gmra.mxu0 %vm716_vm1, %v1387_v47 }
 0xd31   : > { %1589 = vmatpush.msrb.mxu0 %v2035_v10 }
 0xd32   : > { %v1344_v50 = vpop.f32.mrf.mxu1 }
 0xd33   : > { %1482 = vrot.lane.b32.xlu0 %v1344_v50, %s3265_s11  ;;  %v2185_v50 = vld [vmem:[%s3260_s16 + $0x1] ss:$0 sm:$0xff] }
 0xda2   : > { %v1478_v49 = vpop.f32.mrf.mxu1 }
 0xda3   : > { %1490 = vrot.lane.b32.xlu1 %v1478_v49, %s3266_s18  ;;  %s2557_s18 = smov 32  }
 0xda5   : > { %v1483_v56 = vpop.permute.xlu0 %1482 }
 0xda6   : > { %v1493_v57 = vsel %vm716_vm1, %v3026_v7, %v1483_v56  ;;  %v2032_v7 = vld [vmem:[%s3201_s8 + $0x20] sm:$0xff] }
 0xdad   : > { %v1411_v51 = vpop.f32.mrf.mxu0 }
 0xdae   : > { %1486 = vrot.lane.b32.xlu0 %v1411_v51, %s3267_s23  ;;  %s2052_s23 = sshll.u32 %s2672_s30, 1 }
 0xdaf   : > { %s1803_s15 = scalar_lea.hbm %s3268_s5, %s2052_s23  ;;  %s2438_s23 = scalar_lea.hbm %s3268_s5, 4 }
 0xdb0   : > { %s1807_s28 = sshll.u32 %s1803_s15, 4  ;;  %s1808_s28 = int_to_ptr.hbm [resolvable:$true] %s1807_s28 }
 0xdb1   : > { %s2432_s21 = sshra.s32 %s1808_s28, 4  ;;  %s2433_s21 = int_to_ptr.hbm [resolvable:$true] %s2432_s21 }
 0xdb2   : > { %s2434_s1 = scalar_lea.hbm %s2433_s21, 2  ;;  %p2439_p7 = scmp.lt.s32.totalorder %s2433_s21, %s3268_s5 }
 0xdb3   : > { %p2435_p1 = scmp.ne.s32.totalorder %s2433_s21, %s2434_s1  ;;  %p2440_p9 = scmp.lt.s32.totalorder %s2438_s23, %s2434_s1 }
 0xdb5   : > { %p2436_p3 = pnand %p2435_p1, %p2737_p4  ;;  %p2441_p5 = por %p2440_p9, %p2439_p7 }
 0xdb7   : > { %p2437_p12 = pneg %p2436_p3 }
 0xdb9   : > { %p2442_p8 = pnand %p2441_p5, %p2437_p12 }
 0xe15   : > { %v1491_v59 = vpop.permute.xlu1 %1490 }
 0xe20   : > { %v1487_v58 = vpop.permute.xlu0 %1486 }
 0xe21   : > { %v1494_v60 = vsel %vm997_vm2, %v1493_v57, %v1487_v58 }
 0xe22   : > { %v1495_v61 = vsel %vm999_vm3, %v1494_v60, %v1491_v59  ;;  %v1775_v59 = vsel %vm1774_vm15, %v2861_v15, 0.0  ;;  %v1726_v60 = vld [vmem:[#allocation11 + $0x18] sm:$0xff] }
 0xe23   : > { %2030 = vmatmul.msk.f32.vlgmr.msrb.gmra.mxu3 %vm689_vm0, %v1495_v61  ;;  %1742 = vmatpush.msra.mxu1 %v1726_v60  ;;  %v1725_v61 = vld [vmem:[#allocation11 + $0x10] sm:$0xff] }
 0xe25   : > { %1743 = vmatpush.msra.mxu1 %v1725_v61 }
 0xea6   : > { %v1526_v63 = vpop.f32.mrf.mxu3 }
 0xea7   : > { %v1527_v0 = vadd.f32 %v2181_v62, %v1526_v63  ;;  %v1724_v62 = vld [vmem:[#allocation11 + $0x8] sm:$0xff]  ;;  %v1723_v63 = vld [vmem:[#allocation11] sm:$0xff] }
 0xea8   : > { %1744 = vmatpush.msra.mxu1 %v1724_v62 }
 0xea9   : > { %v1529_v1 = vadd.f32 %v1527_v0, %v2986_v46  ;;  %v2034_v46 = vld [vmem:[%s3201_s8 + $0x30] sm:$0xff] }
 0xeaa   : > { %1590 = vmatpush.msrb.mxu0 %v2034_v46  ;;  %1745 = vmatpush.msra.mxu1 %v1723_v63  ;;  %v2186_v46 = vld [vmem:[%s3261_s0 + $0x1] ss:$0 sm:$0xff] }
 0xeab   : > { %v1534_v2 = vsel %vm689_vm0, %v1529_v1, 0.0 }
 0xeac   : > { %1535 = vadd.xlane.f32.xlu2 %v1534_v2  ;;  %1591 = vmatpush.msrb.mxu0 %v2033_v11 }
 0xeae   : > { %1592 = vmatpush.msrb.mxu0 %v2032_v7  ;;  %v2187_v7 = vld [vmem:[#allocation10 + $0x1] ss:$0 sm:$0xff] }
 0xf1f   : > { %v1536_v3 = vpop.xlane.xlu2 %1535 }
 0xf20   : > { %v1537_v5 = vmul.f32 %v1536_v3, %v2915_v35 }
 0xf22   : > { %v1538_v6 = vsub.f32 %v1529_v1, %v1537_v5 }
 0xf24   : > { %v1539_v8 = vmul.f32 %v1538_v6, %v1538_v6 }
 0xf26   : > { %v1540_v9 = vsel %vm689_vm0, %v1539_v8, 0.0 }
 0xf27   : > { %1541 = vadd.xlane.f32.xlu0 %v1540_v9 }
 0xf9a   : > { %v1542_v12 = vpop.xlane.xlu0 %1541 }
 0xf9b   : > { %v1543_v13 = vmul.f32 %v1542_v12, %v2915_v35 }
 0xf9d   : > { %v1544_v14 = vadd.f32 1e-12, %v1543_v13 }
 0xf9f   : > { %2228 = vrsqrt.f32 %v1544_v14  ;;  %vm1551_vm13 = vweird.f32 %v1544_v14 }
 0xfa5   : > { %v2229_v16 = vpop.eup %2228 }
 0xfa6   : > { %v1546_v17 = vmul.f32 %v2229_v16, %v1544_v14  ;;  %vm1552_vm12 = vweird.f32 %v2229_v16 }
 0xfa7   : > { %vm1553_vm14 = vmor %vm1551_vm13, %vm1552_vm12 }
 0xfa8   : > { %v1547_v19 = vmul.f32 %v2229_v16, %v1546_v17 }
 0xfaa   : > { %v1548_v20 = vmul.f32 0.5, %v1547_v19 }
 0xfac   : > { %v1549_v21 = vsub.f32 1.5, %v1548_v20 }
 0xfae   : > { %v1550_v22 = vmul.f32 %v2229_v16, %v1549_v21 }
 0xfb0   : > { %v1554_v24 = vsel %vm1553_vm14, %v2229_v16, %v1550_v22 }
 0xfb1   : > { %v1555_v25 = vmul.f32 %v1554_v24, %v1538_v6 }
 0xfb3   : > { %v1559_v27 = vmul.f32 %v2182_v23, %v1555_v25 }
 0xfb5   : > { %v1563_v28 = vadd.f32 %v2183_v26, %v1559_v27 }
 0xfb7   : > { %2037 = vmatmul.msk.f32.vlgmr.msrb.gmra.mxu0 %vm689_vm0, %v1563_v28 }
0x1034   : > { %v1594_v38 = vpop.f32.mrf.mxu0 }
0x1035   : > { %v1595_v39 = vadd.f32 %v2184_v37, %v1594_v38 }
0x1037   : > { %v1597_v4 = vmul.f32 %v1595_v39, %v1595_v39 }
0x1039   : > { %v1598_v40 = vmul.f32 %v1597_v4, %v1595_v39 }
0x103b   : > { %v1599_v41 = vmul.f32 0.044715, %v1598_v40 }
0x103d   : > { %v1600_v42 = vadd.f32 %v1599_v41, %v1595_v39 }
0x103f   : > { %v1601_v43 = vmul.f32 0.7978846, %v1600_v42 }
0x1041   : > { %2230 = vtanh.f32 %v1601_v43 }
0x1047   : > { %v2231_v44 = vpop.eup %2230 }
0x1048   : > { %v1603_v45 = vadd.f32 1.0, %v2231_v44 }
0x104a   : > { %v1604_v47 = vmul.f32 0.5, %v1603_v45 }
0x104c   : > { %v1605_v48 = vmul.f32 %v1604_v47, %v1595_v39 }
0x104e   : > { %2047 = vmatmul.msk.f32.vlgmr.msrb.gmra.mxu2 %vm1124_vm8, %v1605_v48 }
0x10d1   : > { %v1640_v49 = vpop.f32.mrf.mxu2 }
0x10d2   : > { %v1641_v51 = vadd.f32 %v2185_v50, %v1640_v49 }
0x10d4   : > { %v1643_v52 = vadd.f32 %v1641_v51, %v1563_v28 }
0x10d6   : > { %v1648_v53 = vsel %vm689_vm0, %v1643_v52, 0.0 }
0x10d7   : > { %1649 = vadd.xlane.f32.xlu1 %v1648_v53 }
0x114a   : > { %v1650_v54 = vpop.xlane.xlu1 %1649 }
0x114b   : > { %v1651_v55 = vmul.f32 %v1650_v54, %v2915_v35 }
0x114d   : > { %v1652_v56 = vsub.f32 %v1643_v52, %v1651_v55 }
0x114f   : > { %v1653_v57 = vmul.f32 %v1652_v56, %v1652_v56 }
0x1151   : > { %v1654_v58 = vsel %vm689_vm0, %v1653_v57, 0.0 }
0x1152   : > { %1655 = vadd.xlane.f32.xlu2 %v1654_v58 }
0x115a   : > { %1776 = vadd.xlane.f32.xlu2 %v1775_v59 }
0x11c5   : > { %v1656_v0 = vpop.xlane.xlu2 %1655 }
0x11c6   : > { %v1657_v1 = vmul.f32 %v1656_v0, %v2915_v35 }
0x11c8   : > { %v1658_v2 = vadd.f32 1e-12, %v1657_v1 }
0x11ca   : > { %2232 = vrsqrt.f32 %v1658_v2  ;;  %vm1665_vm3 = vweird.f32 %v1658_v2 }
0x11d0   : > { %v2233_v3 = vpop.eup %2232 }
0x11d1   : > { %v1660_v5 = vmul.f32 %v2233_v3, %v1658_v2  ;;  %vm1666_vm2 = vweird.f32 %v2233_v3 }
0x11d2   : > { %vm1667_vm4 = vmor %vm1665_vm3, %vm1666_vm2 }
0x11d3   : > { %v1661_v6 = vmul.f32 %v2233_v3, %v1660_v5 }
0x11d5   : > { %v1662_v8 = vmul.f32 0.5, %v1661_v6 }
0x11d7   : > { %v1663_v9 = vsub.f32 1.5, %v1662_v8 }
0x11d9   : > { %v1664_v10 = vmul.f32 %v2233_v3, %v1663_v9 }
0x11db   : > { %v1668_v11 = vsel %vm1667_vm4, %v2233_v3, %v1664_v10 }
0x11dc   : > { %v1669_v12 = vmul.f32 %v1668_v11, %v1652_v56 }
0x11de   : > { %v1673_v13 = vmul.f32 %v2186_v46, %v1669_v12 }
0x11e0   : > { %v1677_v35 = vadd.f32 %v2187_v7, %v1673_v13 }
0x11e2   : > { %2049 = vmatmul.msk.f32.vlgmr.msra.gmra.mxu1 %vm689_vm0, %v1677_v35  ;;  %1769 = vmatpush.msra.mxu3 %v1677_v35  ;;  %v1687_v14 = vrot.slane %v1677_v35, 3  ;;  %v1683_v16 = vrot.slane %v1677_v35, 2  ;;  %v1679_v17 = vrot.slane %v1677_v35, 1  ;;  %v1697_v19 = vrot.slane %v1677_v35, 6 }
0x11e3   : > { %2050 = vmatmul.msk.f32.vlgmr.msra.gmra.mxu3 %vm716_vm1, %v2861_v15  ;;  %v1693_v20 = vrot.slane %v1677_v35, 5  ;;  %v1701_v21 = vrot.slane %v1677_v35, 7  ;;  %v1777_v15 = vpop.xlane.xlu2 %1776  ;;  %v1691_v26 = vrot.slane %v1677_v35, 4  ;;  %vm1707_vm1 = vcmask 785408  }
0x11e4   : > { %1688 = vrot.lane.b32.xlu2 %v1687_v14, %s2544_s26  ;;  %1684 = vrot.lane.b32.xlu1 %v1683_v16, %s2545_s19  ;;  %v1778_v23 = vmax.f32 %v1777_v15, 1e-09 }
0x11e5   : > { %1680 = vrot.lane.b32.xlu0 %v1679_v17, %s2557_s18 }
0x11e6   : > { %2234 = vrcp.f32 %v1778_v23 }
0x11ec   : > { %1698 = vrot.lane.b32.xlu1 %v1697_v19, %s2545_s19  ;;  %v2235_v27 = vpop.eup %2234 }
0x11ed   : > { %1694 = vrot.lane.b32.xlu0 %v1693_v20, %s2557_s18 }
0x11f5   : > { %1702 = vrot.lane.b32.xlu0 %v1701_v21, %s2544_s26  ;;  %s670_s26 = scalar_lea.vmem [#allocation13], %s1991_s14 }
0x11f6   : > { %s1805_s24 = sshll.u32 %s670_s26, 4  ;;  %s1806_s24 = int_to_ptr.vmem [resolvable:$true] %s1805_s24 }
0x123e   : > { %v1689_v38 = vpop.permute.xlu2 %1688 }
0x1256   : > { %v1685_v24 = vpop.permute.xlu1 %1684 }
0x1257   : > { %v1681_v22 = vpop.permute.xlu0 %1680 }
0x1258   : > { %v1705_v28 = vsel %vm689_vm0, %v1677_v35, %v1681_v22 }
0x1259   : > { %v1706_v33 = vsel %vm1124_vm8, %v1705_v28, %v1685_v24 }
0x125a   : > { %v1708_v4 = vsel %vm1707_vm1, %v1706_v33, %v1689_v38 }
0x125e   : > { %v1699_v29 = vpop.permute.xlu1 %1698 }
0x125f   : > { %v1695_v25 = vpop.permute.xlu0 %1694 }
0x1260   : > { %v1709_v30 = vsel %vm689_vm0, %v1691_v26, %v1695_v25 }
0x1261   : > { %v1710_v34 = vsel %vm1124_vm8, %v1709_v30, %v1699_v29 }
0x1266   : > { %v1771_v32 = vpop.f32.mrf.mxu3 }
0x1267   : > { %v1780_v18 = vmul.f32 %v2235_v27, %v1771_v32  ;;  %v1703_v36 = vpop.permute.xlu0 %1702 }
0x1268   : > { %v1711_v37 = vsel %vm1707_vm1, %v1710_v34, %v1703_v36 }
0x1269   : > { %v1714_v39 = vrot.slane %v1711_v37, 7  ;;  %1782 = vrot.lane.b32.xlu2 %v1780_v18, %s2557_s18 }
0x126b   : > { %v1716_v40 = vsel %vm1715_vm5, %v1708_v4, %v1714_v39 }
0x126c   : > { %1722 = vst.msk [vmem:[%s670_s26] sm:$0x3] %vm1720_vm6, %v1716_v40 }
0x126d   : > { %2445 = shalt.err (!%p2442_p8)
}
0x126e   : > { %2075 = dma.vmem_to_hbm [thread:$0]  (%p2737_p4), %s1806_s24, 32, %s1808_s28, %s1789_s13   ;;  %v1747_v42 = vpop.f32.mrf.mxu1 }
0x126f   : > { %s3270_s15 = sld [smem:[#allocation37_spill]]  ;;  %s676_s11 = scalar_lea.vmem [#allocation14], %s2790_s12 }
0x1270   : > { %s3271_s21 = sld [smem:[#allocation39_spill]]  ;;  %s1818_s23 = sshll.u32 %s676_s11, 4  ;;  %s1819_s23 = int_to_ptr.vmem [resolvable:$true] %s1818_s23 }
0x1271   : > { %s1794_s24 = scalar_lea.sflag [#allocation15], %s2790_s12 }
0x1275   : > { %v1727_v41 = vld [vmem:[%s3270_s15] sm:$0x1] }
0x1276   : > { %v1748_v43 = vadd.f32 %v1747_v42, %v1727_v41  ;;  %s1816_s1 = scalar_lea.hbm %s3271_s21, %s2672_s30  ;;  %s2466_s19 = scalar_lea.hbm %s3271_s21, 2 }
0x1277   : > { %s1820_s14 = sshll.u32 %s1816_s1, 4  ;;  %s1821_s14 = int_to_ptr.hbm [resolvable:$true] %s1820_s14 }
0x1278   : > { %2236 = vtanh.f32 %v1748_v43  ;;  %s2460_s28 = sshra.s32 %s1821_s14, 4  ;;  %s2461_s28 = int_to_ptr.hbm [resolvable:$true] %s2460_s28 }
0x1279   : > { %s2462_s13 = scalar_lea.hbm %s2461_s28, 1  ;;  %p2467_p0 = scmp.lt.s32.totalorder %s2461_s28, %s3271_s21 }
0x127a   : > { %p2463_p10 = scmp.ne.s32.totalorder %s2461_s28, %s2462_s13  ;;  %p2468_p2 = scmp.lt.s32.totalorder %s2466_s19, %s2462_s13 }
0x127c   : > { %p2464_p13 = pnand %p2463_p10, %p2737_p4  ;;  %p2469_p1 = por %p2468_p2, %p2467_p0 }
0x127e   : > { %v2237_v44 = vpop.eup %2236  ;;  %p2465_p11 = pneg %p2464_p13 }
0x1280   : > { %p2470_p3 = pnand %p2469_p1, %p2465_p11 }
0x12c3   : > { %v1783_v45 = vpop.permute.xlu2 %1782 }
0x12c4   : > { %v1785_v47 = vsel %vm689_vm0, %v2237_v44, %v1783_v45 }
0x12c5   : > { %v1786_v48 = vsel %vm1124_vm8, %v1785_v47, 0.0 }
0x12c6   : > { %1787 = vst [vmem:[%s676_s11] sm:$0x1] %v1786_v48 }
0x12c7   : > { %2473 = shalt.err (!%p2470_p3)
}
0x12c8   : > { %2076 = dma.vmem_to_hbm [thread:$0]  (%p2737_p4), %s1819_s23, 16, %s1821_s14, %s1794_s24  }
0x12c9 PF: > { %s3272_s12 = sld [smem:[#allocation23_spill]]  ;;  %p3274_p12 = scmp.ge.s32.totalorder %s2532_s27, 2 }
0x12cb   : > { %p2100_p7 = pnand %p3274_p12, %p2741_p6 }
0x12cd   : > { %p2101_p9 = pneg %p2100_p7 }
0x12cf   : > { %s1832_s29 = sand.u32 1, %s3272_s12  }
0x12d0   : > { %s1833_s1 = scalar_lea.sflag [#allocation4], %s1832_s29 }
0x12d1   : > { %2511 = dma.done.wait (%p2101_p9), %s1833_s1, 32  }
0x12d2   : > { %2513 = vsyncadd (%p2101_p9), %s1833_s1, 4294967264  ;;  %s1843_s11 = scalar_lea.sflag [#allocation15], %s1832_s29 }
0x12d3   : > { %2515 = dma.done.wait (%p2101_p9), %s1843_s11, 16  }
0x12d4   : > { %2517 = vsyncadd (%p2101_p9), %s1843_s11, 4294967280  ;;  %s3275_s27 = sld [smem:[#allocation25_spill]]  ;;  %s3278_s24 = smov %s2524_s25 }
0x12d5   : > { %s3276_s28 = sld [smem:[#allocation24_spill]] }
0x12d6   : > { %s3277_s26 = sld [smem:[#allocation26_spill]] }
0x12da   : > { %p39_p4 = scmp.ge.s32.totalorder %s3275_s27, 4  }
0x12db   : > { %s3279_s25 = smov %s3276_s28 }
0x12dc   :  { %41 = sbr.rel (!%p39_p4) target bundleno = 23 (0x17), region = 187 }
0x12e1   :  { %1848 = vsyncpa [#allocation3], 1 }
0x12e2   :  { %1850 = vsyncpa [#allocation3 + $0x1], 1 }
0x12e3   :  { %1851 = vsyncpa [#allocation6], 1 }
0x12e4   :  { %1853 = vsyncpa [#allocation6 + $0x1], 1 }
0x12e5   :  { %1854 = vsyncpa [#allocation9], 1 }
0x12e6   :  { %1855 = vsyncpa [#allocation12], 1 }
0x12e7   :  { %1856 = vsyncpa [#allocation4], 1 }
0x12e8   :  { %1858 = vsyncpa [#allocation4 + $0x1], 1 }
0x12e9   :  { %1859 = vsyncpa [#allocation15], 1 }
0x12ea   :  { %1861 = vsyncpa [#allocation15 + $0x1], 1 }

</bundles_post_ra>
